<compile_context>
chip_gen: v6e
topology: v6e:2x2x1
jax: 0.10.0
libtpu: 0.0.40
codegen_flags: <defaults>
</compile_context>

<pallas_src>
import functools
import math

import jax
import jax.numpy as jnp
from jax.experimental import pallas as pl
from jax.experimental.pallas import tpu as pltpu


# ----------------------------------------------------------------------------
# VMEM budget per TPU generation
# ----------------------------------------------------------------------------
@functools.lru_cache(maxsize=1)
def _vmem_limit_bytes():
    try:
        info = pltpu.get_tpu_info()
        cap = getattr(info, "vmem_capacity_bytes", None)
        if cap:
            # ~96 MiB on v5e/v6e (128 MiB physical), ~48 MiB on v7x (64 MiB).
            return int(min(cap * 3 // 4, 100 * 1024 * 1024))
    except Exception:
        pass
    return 48 * 1024 * 1024


def _compiler_params(dimension_semantics):
    return pltpu.CompilerParams(
        dimension_semantics=dimension_semantics,
        vmem_limit_bytes=_vmem_limit_bytes())


# ----------------------------------------------------------------------------
# Tiling helpers
# ----------------------------------------------------------------------------
def _pick_tile(dim, target, align):
    """Largest tile <= target that divides `dim` and is a multiple of `align`,
    else the full dimension (a full-extent block is always legal)."""
    if dim <= target:
        return dim
    t = (min(target, dim) // align) * align
    while t >= align:
        if dim % t == 0:
            return t
        t -= align
    return dim


def _group_block(G, max_gb=16):
    """(batch, head) groups processed per MHA grid step; keep >=2 grid steps
    when possible so v7x's two TensorCores both get work."""
    for gb in range(min(G // 2, max_gb), 0, -1):
        if G % gb == 0:
            return gb
    return G  # G == 1


# ----------------------------------------------------------------------------
# Tiled linear kernel (bf16 operands, f32 accumulation)
# ----------------------------------------------------------------------------
def _linear_kernel(x_ref, w_ref, b_ref, o_ref, acc_ref, *, activation):
    @pl.when(pl.program_id(2) == 0)
    def _():
        acc_ref[...] = jnp.zeros_like(acc_ref)

    acc_ref[...] += jnp.dot(x_ref[...], w_ref[...],
                            preferred_element_type=jnp.float32)

    @pl.when(pl.program_id(2) == pl.num_programs(2) - 1)
    def _():
        y = acc_ref[...] + b_ref[...].astype(jnp.float32)
        if activation == "relu":
            y = jnp.maximum(y, 0.0)
        o_ref[...] = y.astype(o_ref.dtype)


def linear(x, w, b, activation=None, out_dtype=jnp.float32):
    """x: [M, K], w: [K, N], b: [N] -> [M, N]. bf16 matmul, f32 accumulate."""
    M, K = x.shape
    K2, N = w.shape
    assert K == K2
    x = x.astype(jnp.bfloat16)
    w = w.astype(jnp.bfloat16)
    b2 = b.reshape(1, N).astype(jnp.float32)

    tm = _pick_tile(M, 512, 16)        # bf16 vreg packs [16,128]
    tn = _pick_tile(N, 512, 128)
    tk = K if K <= 2048 else _pick_tile(K, 2048, 128)
    grid = (M // tm, N // tn, K // tk)

    return pl.pallas_call(
        functools.partial(_linear_kernel, activation=activation),
        out_shape=jax.ShapeDtypeStruct((M, N), out_dtype),
        grid=grid,
        in_specs=[
            pl.BlockSpec((tm, tk), lambda i, j, k: (i, k)),
            pl.BlockSpec((tk, tn), lambda i, j, k: (k, j)),
            pl.BlockSpec((1, tn), lambda i, j, k: (0, j)),
        ],
        out_specs=pl.BlockSpec((tm, tn), lambda i, j, k: (i, j)),
        scratch_shapes=[pltpu.VMEM((tm, tn), jnp.float32)],
        compiler_params=_compiler_params(("parallel", "parallel", "arbitrary")),
    )(x, w, b2)


# ----------------------------------------------------------------------------
# Linear + residual add + LayerNorm fused in the matmul finalize step
# ----------------------------------------------------------------------------
def _linear_add_ln_kernel(x_ref, w_ref, b_ref, res_ref, o_ref, acc_ref, *, eps):
    @pl.when(pl.program_id(1) == 0)
    def _():
        acc_ref[...] = jnp.zeros_like(acc_ref)

    acc_ref[...] += jnp.dot(x_ref[...], w_ref[...],
                            preferred_element_type=jnp.float32)

    @pl.when(pl.program_id(1) == pl.num_programs(1) - 1)
    def _():
        y = (acc_ref[...] + b_ref[...].astype(jnp.float32)
             + res_ref[...].astype(jnp.float32))
        mean = jnp.mean(y, axis=-1, keepdims=True)
        yc = y - mean
        var = jnp.mean(yc * yc, axis=-1, keepdims=True)
        o_ref[...] = (yc * jax.lax.rsqrt(var + eps)).astype(o_ref.dtype)


def linear_add_layernorm(x, w, b, residual, eps=1e-5):
    """LayerNorm(x @ w + b + residual). LN over the full last dim (gamma=1,
    beta=0, eps=1e-5). x bf16-cast, residual stays f32."""
    M, K = x.shape
    K2, N = w.shape
    assert K == K2 and residual.shape == (M, N)
    x = x.astype(jnp.bfloat16)
    w = w.astype(jnp.bfloat16)
    b2 = b.reshape(1, N).astype(jnp.float32)
    residual = residual.astype(jnp.float32)

    tm = _pick_tile(M, 512, 16)
    tk = K if K <= 2048 else _pick_tile(K, 2048, 128)
    grid = (M // tm, K // tk)

    return pl.pallas_call(
        functools.partial(_linear_add_ln_kernel, eps=eps),
        out_shape=jax.ShapeDtypeStruct((M, N), jnp.float32),
        grid=grid,
        in_specs=[
            pl.BlockSpec((tm, tk), lambda i, k: (i, k)),
            pl.BlockSpec((tk, N), lambda i, k: (k, 0)),
            pl.BlockSpec((1, N), lambda i, k: (0, 0)),
            pl.BlockSpec((tm, N), lambda i, k: (i, 0)),
        ],
        out_specs=pl.BlockSpec((tm, N), lambda i, k: (i, 0)),
        scratch_shapes=[pltpu.VMEM((tm, N), jnp.float32)],
        compiler_params=_compiler_params(("parallel", "arbitrary")),
    )(x, w, b2, residual)


# ----------------------------------------------------------------------------
# Fused position-wise FFN: W1 -> ReLU -> W2 -> +residual -> LayerNorm.
# Loops over d_ff blocks so the [M, d_ff] intermediate never reaches HBM.
# ----------------------------------------------------------------------------
def _ffn_kernel(x_ref, w1_ref, b1_ref, w2_ref, b2_ref, o_ref, acc_ref, *, eps):
    @pl.when(pl.program_id(1) == 0)
    def _():
        acc_ref[...] = jnp.zeros_like(acc_ref)

    xb = x_ref[...].astype(jnp.bfloat16)
    h = jnp.dot(xb, w1_ref[...], preferred_element_type=jnp.float32)
    h = jnp.maximum(h + b1_ref[...].astype(jnp.float32), 0.0)
    acc_ref[...] += jnp.dot(h.astype(jnp.bfloat16), w2_ref[...],
                            preferred_element_type=jnp.float32)

    @pl.when(pl.program_id(1) == pl.num_programs(1) - 1)
    def _():
        y = (acc_ref[...] + b2_ref[...].astype(jnp.float32)
             + x_ref[...].astype(jnp.float32))      # residual = FFN input
        mean = jnp.mean(y, axis=-1, keepdims=True)
        yc = y - mean
        var = jnp.mean(yc * yc, axis=-1, keepdims=True)
        o_ref[...] = (yc * jax.lax.rsqrt(var + eps)).astype(o_ref.dtype)


def ffn_add_layernorm(x, w1, b1, w2, b2, eps=1e-5):
    """x: [M, E] f32. Returns LayerNorm(relu(x@w1+b1)@w2 + b2 + x)."""
    M, E = x.shape
    E2, F = w1.shape
    F2, E3 = w2.shape
    assert E2 == E and F2 == F and E3 == E
    x = x.astype(jnp.float32)
    w1 = w1.astype(jnp.bfloat16)
    w2 = w2.astype(jnp.bfloat16)
    b1r = b1.reshape(1, F).astype(jnp.float32)
    b2r = b2.reshape(1, E).astype(jnp.float32)

    tm = _pick_tile(M, 512, 16)
    tff = _pick_tile(F, 1024, 128)
    grid = (M // tm, F // tff)

    return pl.pallas_call(
        functools.partial(_ffn_kernel, eps=eps),
        out_shape=jax.ShapeDtypeStruct((M, E), jnp.float32),
        grid=grid,
        in_specs=[
            pl.BlockSpec((tm, E), lambda i, f: (i, 0)),
            pl.BlockSpec((E, tff), lambda i, f: (0, f)),
            pl.BlockSpec((1, tff), lambda i, f: (0, f)),
            pl.BlockSpec((tff, E), lambda i, f: (f, 0)),
            pl.BlockSpec((1, E), lambda i, f: (0, 0)),
        ],
        out_specs=pl.BlockSpec((tm, E), lambda i, f: (i, 0)),
        scratch_shapes=[pltpu.VMEM((tm, E), jnp.float32)],
        compiler_params=_compiler_params(("parallel", "arbitrary")),
    )(x, w1, b1r, w2, b2r)


# ----------------------------------------------------------------------------
# Multi-head self-attention: several (batch, head) groups per grid step,
# batched dot_general over the group axis, pad mask broadcast in-kernel.
# ----------------------------------------------------------------------------
def _mha_kernel(pad_ref, q_ref, k_ref, v_ref, ctx_ref, attn_ref, *, scale):
    q = q_ref[...]                                   # (Gb, S, D) bf16
    k = k_ref[...]
    v = v_ref[...]
    key_is_pad = pad_ref[...] > 0.0                  # (Gb, 1, S) bool

    scores = jnp.einsum('gqd,gkd->gqk', q, k,
                        preferred_element_type=jnp.float32) * scale
    scores = jnp.where(key_is_pad, jnp.float32(-1e9), scores)

    m = jnp.max(scores, axis=-1, keepdims=True)
    e = jnp.exp(scores - m)
    denom = jnp.sum(e, axis=-1, keepdims=True)
    attn = e / denom                                 # exact division (f32)

    ctx = jnp.einsum('gqk,gkd->gqd', attn.astype(v.dtype), v,
                     preferred_element_type=jnp.float32)
    ctx_ref[...] = ctx.astype(ctx_ref.dtype)
    attn_ref[...] = attn.astype(attn_ref.dtype)


def multi_head_attention(q, k, v, pad, *, qkv_dim):
    """q/k/v: [G=B*H, S, D] bf16; pad: [G, 1, S] f32 (1.0 == pad key).
    Returns (context [G, S, D] bf16, attn [G, S, S] f32)."""
    G, S, D = q.shape
    assert D == qkv_dim
    Gb = _group_block(G)
    scale = 1.0 / math.sqrt(D)

    return pl.pallas_call(
        functools.partial(_mha_kernel, scale=scale),
        out_shape=(
            jax.ShapeDtypeStruct((G, S, D), jnp.bfloat16),
            jax.ShapeDtypeStruct((G, S, S), jnp.float32),
        ),
        grid=(G // Gb,),
        in_specs=[
            pl.BlockSpec((Gb, 1, S), lambda g: (g, 0, 0)),   # pad indicator
            pl.BlockSpec((Gb, S, D), lambda g: (g, 0, 0)),   # Q
            pl.BlockSpec((Gb, S, D), lambda g: (g, 0, 0)),   # K
            pl.BlockSpec((Gb, S, D), lambda g: (g, 0, 0)),   # V
        ],
        out_specs=(
            pl.BlockSpec((Gb, S, D), lambda g: (g, 0, 0)),
            pl.BlockSpec((Gb, S, S), lambda g: (g, 0, 0)),
        ),
        compiler_params=_compiler_params(("parallel",)),
    )(pad, q, k, v)


# ----------------------------------------------------------------------------
# Parameter init (deterministic, synthetic)
# ----------------------------------------------------------------------------
def _init_linear(key, d_in, d_out):
    kw, kb = jax.random.split(key)
    bound = 1.0 / math.sqrt(d_in)
    w = jax.random.uniform(kw, (d_in, d_out), jnp.float32, -bound, bound)
    b = jax.random.uniform(kb, (d_out,), jnp.float32, -bound, bound)
    return w, b


def init_params(key, *, n_layers, vocab_size, embed_dim, n_heads, qkv_dim, d_ff):
    keys = jax.random.split(key, 1 + n_layers)
    emb = jax.random.normal(keys[0], (vocab_size, embed_dim), jnp.float32)
    emb = emb.at[0].set(0.0)  # padding_idx=0
    layers = []
    for li in range(n_layers):
        lk = jax.random.split(keys[1 + li], 6)
        wq, bq = _init_linear(lk[0], embed_dim, n_heads * qkv_dim)
        wk, bk = _init_linear(lk[1], embed_dim, n_heads * qkv_dim)
        wv, bv = _init_linear(lk[2], embed_dim, n_heads * qkv_dim)
        wo, bo = _init_linear(lk[3], n_heads * qkv_dim, embed_dim)
        w1, b1 = _init_linear(lk[4], embed_dim, d_ff)
        w2, b2 = _init_linear(lk[5], d_ff, embed_dim)
        # Fuse Q/K/V weights once: one matmul per layer reads x only once.
        wqkv = jnp.concatenate([wq, wk, wv], axis=1).astype(jnp.bfloat16)
        bqkv = jnp.concatenate([bq, bk, bv], axis=0)
        layers.append(dict(
            wqkv=wqkv, bqkv=bqkv,
            wo=wo.astype(jnp.bfloat16), bo=bo,
            w1=w1.astype(jnp.bfloat16), b1=b1,
            w2=w2.astype(jnp.bfloat16), b2=b2))
    return dict(emb=emb, layers=layers)


# ----------------------------------------------------------------------------
# Forward pass (glue in plain JAX, hot paths in Pallas)
# ----------------------------------------------------------------------------
def encoder_layer(p, x, pad_bh, *, n_heads, qkv_dim):
    B, S, E = x.shape
    H, D = n_heads, qkv_dim
    M = B * S
    xf = x.reshape(M, E)                                       # f32 residual

    # Fused Q/K/V projection (one matmul, bf16 output).
    qkv = linear(xf, p["wqkv"], p["bqkv"], out_dtype=jnp.bfloat16)
    # Build per-head [B*H, S, D] layout once in glue (cheap XLA transpose).
    qkv = qkv.reshape(B, S, 3, H, D).transpose(2, 0, 3, 1, 4)  # [3, B, H, S, D]
    q = qkv[0].reshape(B * H, S, D)
    k = qkv[1].reshape(B * H, S, D)
    v = qkv[2].reshape(B * H, S, D)

    ctx, attn = multi_head_attention(q, k, v, pad_bh, qkv_dim=D)
    ctx = ctx.reshape(B, H, S, D).transpose(0, 2, 1, 3).reshape(M, H * D)

    # TODO(synk): dropout treated as identity (inference mode).
    # Output projection + residual add + LayerNorm fused in one kernel.
    x1 = linear_add_layernorm(ctx, p["wo"], p["bo"], xf)       # (M, E) f32

    # Whole FFN (+ residual + LayerNorm) fused; [M, d_ff] never hits HBM.
    x2 = ffn_add_layernorm(x1, p["w1"], p["b1"], p["w2"], p["b2"])

    return x2.reshape(B, S, E), attn.reshape(B, H, S, S)


def attr_encoder_forward(params, attr_out, attrlens, *, n_heads, qkv_dim):
    """attr_out: [B, S] int32 token ids; attrlens: [B, 1] (only .shape used)."""
    del attrlens  # the PyTorch forward only reads its size, never the values
    B, S = attr_out.shape
    H = n_heads

    x = jnp.take(params["emb"], attr_out, axis=0)              # (B, S, E) gather (glue)
    # dropout on embeddings: identity in eval mode

    # Per-key pad indicator per (batch, head) group; broadcast in-kernel.
    pad = (attr_out == 0).astype(jnp.float32)                  # (B, S)
    pad_bh = jnp.broadcast_to(pad[:, None, None, :],
                              (B, H, 1, S)).reshape(B * H, 1, S)

    attns = []
    for lp in params["layers"]:
        x, attn = encoder_layer(lp, x, pad_bh, n_heads=H, qkv_dim=qkv_dim)
        attns.append(attn)
    return x, attns


# ----------------------------------------------------------------------------
# Demo
# ----------------------------------------------------------------------------
if __name__ == "__main__":
    # Small shapes consistent with the module (module fixes QKVdim=64 and
    # d_ff=2048; B/S/E shrunk for the demo).
    B, S = 2, 8
    EMBED_DIM = 32
    N_HEADS = 2
    QKV_DIM = 64
    D_FF = 2048
    N_LAYERS = 2
    VOCAB = 20

    key = jax.random.PRNGKey(0)
    k_params, k_tok = jax.random.split(key)

    params = init_params(k_params, n_layers=N_LAYERS, vocab_size=VOCAB,
                         embed_dim=EMBED_DIM, n_heads=N_HEADS,
                         qkv_dim=QKV_DIM, d_ff=D_FF)

    # Token ids with trailing padding zeros (padding_idx=0).
    attr_out = jax.random.randint(k_tok, (B, S), 1, VOCAB, dtype=jnp.int32)
    attr_out = attr_out.at[0, 6:].set(0)
    attr_out = attr_out.at[1, 5:].set(0)
    attrlens = jnp.array([[6], [5]], dtype=jnp.int32)

    fwd = jax.jit(functools.partial(attr_encoder_forward,
                                    n_heads=N_HEADS, qkv_dim=QKV_DIM))
    outputs, attn_list = fwd(params, attr_out, attrlens)

    outputs = jax.block_until_ready(outputs)
    attn_list = [jax.block_until_ready(a) for a in attn_list]

    assert outputs.shape == (B, S, EMBED_DIM)
    assert all(a.shape == (B, N_HEADS, S, S) for a in attn_list)
    assert bool(jnp.all(jnp.isfinite(outputs)))
    assert all(bool(jnp.all(jnp.isfinite(a))) for a in attn_list)

    print("KERNEL_OK")
</pallas_src>

<mosaic_0001>
module attributes {stable_mosaic.version = 11 : i64} {
  func.func @_linear_kernel(%arg0: i32, %arg1: i32, %arg2: i32, %arg3: memref<16x32xbf16, #tpu.memory_space<vmem>>, %arg4: memref<32x384xbf16, #tpu.memory_space<vmem>>, %arg5: memref<1x384xf32, #tpu.memory_space<vmem>>, %arg6: memref<16x384xbf16, #tpu.memory_space<vmem>>, %arg7: memref<16x384xf32, #tpu.memory_space<vmem>>) attributes {dimension_semantics = [#tpu.dimension_semantics<parallel>, #tpu.dimension_semantics<parallel>, #tpu.dimension_semantics<arbitrary>], iteration_bounds = array<i64: 1, 1, 1>, scalar_prefetch = 0 : i64, scratch_operands = 1 : i64, tpu.core_type = #tpu.core_type<tc>, window_params = [{transform_indices = @transform_0, window_bounds = array<i64: 16, 32>}, {transform_indices = @transform_1, window_bounds = array<i64: 32, 384>}, {transform_indices = @transform_2, window_bounds = array<i64: 1, 384>}, {transform_indices = @transform_3, window_bounds = array<i64: 16, 384>}]} {
    %c0_i32 = arith.constant 0 : i32
    %0 = arith.cmpi eq, %arg2, %c0_i32 : i32
    %1 = arith.extui %0 : i1 to i32
    %c0_i32_0 = arith.constant 0 : i32
    %2 = arith.cmpi ne, %1, %c0_i32_0 : i32
    scf.if %2 {
      %cst_10 = arith.constant 0.000000e+00 : f32
      %12 = vector.broadcast %cst_10 : f32 to vector<16x384xf32>
      %c0_11 = arith.constant 0 : index
      %c0_12 = arith.constant 0 : index
      %13 = vector.load %arg7[%c0_11, %c0_12] : memref<16x384xf32, #tpu.memory_space<vmem>>, vector<16x384xf32>
      tpu.vector_store %arg7[%c0_11, %c0_12], %12 {strides = array<i32>} : memref<16x384xf32, #tpu.memory_space<vmem>>, vector<16x384xf32>,
    } else {
    }
    %c0 = arith.constant 0 : index
    %c0_1 = arith.constant 0 : index
    %3 = vector.load %arg7[%c0, %c0_1] : memref<16x384xf32, #tpu.memory_space<vmem>>, vector<16x384xf32>
    %c0_2 = arith.constant 0 : index
    %c0_3 = arith.constant 0 : index
    %4 = vector.load %arg3[%c0_2, %c0_3] : memref<16x32xbf16, #tpu.memory_space<vmem>>, vector<16x32xbf16>
    %c0_4 = arith.constant 0 : index
    %c0_5 = arith.constant 0 : index
    %5 = vector.load %arg4[%c0_4, %c0_5] : memref<32x384xbf16, #tpu.memory_space<vmem>>, vector<32x384xbf16>
    %cst = arith.constant dense<0.000000e+00> : vector<16x384xf32>
    %6 = tpu.matmul %4, %5, %cst {dimension_numbers = #tpu.dot_dimension_numbers<[1], [0], [0], [1], [0, 0, 1, 1], [], []>} : vector<16x32xbf16>, vector<32x384xbf16>, vector<16x384xf32> -> vector<16x384xf32>
    %7 = arith.addf %3, %6 : vector<16x384xf32>
    %c0_6 = arith.constant 0 : index
    %c0_7 = arith.constant 0 : index
    %8 = vector.load %arg7[%c0_6, %c0_7] : memref<16x384xf32, #tpu.memory_space<vmem>>, vector<16x384xf32>
    tpu.vector_store %arg7[%c0_6, %c0_7], %7 {strides = array<i32>} : memref<16x384xf32, #tpu.memory_space<vmem>>, vector<16x384xf32>,
    %c0_i32_8 = arith.constant 0 : i32
    %9 = arith.cmpi eq, %arg2, %c0_i32_8 : i32
    %10 = arith.extui %9 : i1 to i32
    %c0_i32_9 = arith.constant 0 : i32
    %11 = arith.cmpi ne, %10, %c0_i32_9 : i32
    scf.if %11 {
      %c0_10 = arith.constant 0 : index
      %c0_11 = arith.constant 0 : index
      %12 = vector.load %arg7[%c0_10, %c0_11] : memref<16x384xf32, #tpu.memory_space<vmem>>, vector<16x384xf32>
      %c0_12 = arith.constant 0 : index
      %c0_13 = arith.constant 0 : index
      %13 = vector.load %arg5[%c0_12, %c0_13] : memref<1x384xf32, #tpu.memory_space<vmem>>, vector<1x384xf32>
      %14 = vector.broadcast %13 : vector<1x384xf32> to vector<16x384xf32>
      %15 = arith.addf %12, %14 : vector<16x384xf32>
      %16 = arith.truncf %15 : vector<16x384xf32> to vector<16x384xbf16>
      %c0_14 = arith.constant 0 : index
      %c0_15 = arith.constant 0 : index
      %17 = vector.load %arg6[%c0_14, %c0_15] : memref<16x384xbf16, #tpu.memory_space<vmem>>, vector<16x384xbf16>
      tpu.vector_store %arg6[%c0_14, %c0_15], %16 {strides = array<i32>} : memref<16x384xbf16, #tpu.memory_space<vmem>>, vector<16x384xbf16>,
    } else {
    }
    return
  }
  func.func @transform_0(%arg0: i32, %arg1: i32, %arg2: i32) -> (i32, i32) {
    %c0_i32 = arith.constant 0 : i32
    return %arg0, %arg2 : i32, i32
  }
  func.func @transform_1(%arg0: i32, %arg1: i32, %arg2: i32) -> (i32, i32) {
    %c0_i32 = arith.constant 0 : i32
    return %arg2, %arg1 : i32, i32
  }
  func.func @transform_2(%arg0: i32, %arg1: i32, %arg2: i32) -> (i32, i32) {
    %c0_i32 = arith.constant 0 : i32
    %c0_i32_0 = arith.constant 0 : i32
    return %c0_i32, %arg1 : i32, i32
  }
  func.func @transform_3(%arg0: i32, %arg1: i32, %arg2: i32) -> (i32, i32) {
    %c0_i32 = arith.constant 0 : i32
    return %arg0, %arg1 : i32, i32
  }
}

module attributes {stable_mosaic.version = 11 : i64} {
  func.func @_mha_kernel(%arg0: i32, %arg1: memref<2x1x8xf32, #tpu.memory_space<vmem>>, %arg2: memref<2x8x64xbf16, #tpu.memory_space<vmem>>, %arg3: memref<2x8x64xbf16, #tpu.memory_space<vmem>>, %arg4: memref<2x8x64xbf16, #tpu.memory_space<vmem>>, %arg5: memref<2x8x64xbf16, #tpu.memory_space<vmem>>, %arg6: memref<2x8x8xf32, #tpu.memory_space<vmem>>) attributes {dimension_semantics = [#tpu.dimension_semantics<parallel>], iteration_bounds = array<i64: 2>, scalar_prefetch = 0 : i64, scratch_operands = 0 : i64, tpu.core_type = #tpu.core_type<tc>, window_params = [{transform_indices = @transform_0, window_bounds = array<i64: 2, 1, 8>}, {transform_indices = @transform_1, window_bounds = array<i64: 2, 8, 64>}, {transform_indices = @transform_2, window_bounds = array<i64: 2, 8, 64>}, {transform_indices = @transform_3, window_bounds = array<i64: 2, 8, 64>}, {transform_indices = @transform_4, window_bounds = array<i64: 2, 8, 64>}, {transform_indices = @transform_5, window_bounds = array<i64: 2, 8, 8>}]} {
    %c0 = arith.constant 0 : index
    %c0_0 = arith.constant 0 : index
    %c0_1 = arith.constant 0 : index
    %0 = vector.load %arg2[%c0, %c0_0, %c0_1] : memref<2x8x64xbf16, #tpu.memory_space<vmem>>, vector<2x8x64xbf16>
    %c0_2 = arith.constant 0 : index
    %c0_3 = arith.constant 0 : index
    %c0_4 = arith.constant 0 : index
    %1 = vector.load %arg3[%c0_2, %c0_3, %c0_4] : memref<2x8x64xbf16, #tpu.memory_space<vmem>>, vector<2x8x64xbf16>
    %c0_5 = arith.constant 0 : index
    %c0_6 = arith.constant 0 : index
    %c0_7 = arith.constant 0 : index
    %2 = vector.load %arg4[%c0_5, %c0_6, %c0_7] : memref<2x8x64xbf16, #tpu.memory_space<vmem>>, vector<2x8x64xbf16>
    %c0_8 = arith.constant 0 : index
    %c0_9 = arith.constant 0 : index
    %c0_10 = arith.constant 0 : index
    %3 = vector.load %arg1[%c0_8, %c0_9, %c0_10] : memref<2x1x8xf32, #tpu.memory_space<vmem>>, vector<2x1x8xf32>
    %cst = arith.constant 0.000000e+00 : f32
    %4 = vector.broadcast %cst : f32 to vector<2x1x8xf32>
    %5 = arith.cmpf ogt, %3, %4 : vector<2x1x8xf32>
    "tpu.trace_start"() <{level = 10 : i32, message = "gqd,gkd->gqk"}> : () -> ()
    %cst_11 = arith.constant dense<0.000000e+00> : vector<2x8x8xf32>
    %6 = tpu.matmul %0, %1, %cst_11 {dimension_numbers = #tpu.dot_dimension_numbers<[2], [2], [1], [1], [0, 0, 0, 1, 1, 1], [0], [0]>} : vector<2x8x64xbf16>, vector<2x8x64xbf16>, vector<2x8x8xf32> -> vector<2x8x8xf32>
    "tpu.trace_stop"() : () -> ()
    %cst_12 = arith.constant 1.250000e-01 : f32
    %7 = vector.broadcast %cst_12 : f32 to vector<2x8x8xf32>
    %8 = arith.mulf %6, %7 : vector<2x8x8xf32>
    %cst_13 = arith.constant -1.000000e+09 : f32
    %9 = vector.shape_cast %5 : vector<2x1x8xi1> to vector<2x1x8xi1>
    %10 = vector.broadcast %9 : vector<2x1x8xi1> to vector<2x8x8xi1>
    %11 = vector.broadcast %cst_13 : f32 to vector<2x8x8xf32>
    %12 = arith.select %10, %11, %8 : vector<2x8x8xi1>, vector<2x8x8xf32>
    %cst_14 = arith.constant dense<0xFF800000> : vector<2x8xf32>
    %13 = vector.multi_reduction <maximumf>, %12, %cst_14 [2] : vector<2x8x8xf32> to vector<2x8xf32>
    %14 = vector.shape_cast %13 : vector<2x8xf32> to vector<2x8x1xf32>
    %15 = vector.broadcast %14 : vector<2x8x1xf32> to vector<2x8x8xf32>
    %16 = arith.subf %12, %15 : vector<2x8x8xf32>
    %17 = math.exp %16 : vector<2x8x8xf32>
    %cst_15 = arith.constant dense<0.000000e+00> : vector<2x8xf32>
    %18 = vector.multi_reduction <add>, %17, %cst_15 [2] : vector<2x8x8xf32> to vector<2x8xf32>
    %19 = vector.shape_cast %18 : vector<2x8xf32> to vector<2x8x1xf32>
    %20 = vector.broadcast %19 : vector<2x8x1xf32> to vector<2x8x8xf32>
    %21 = arith.divf %17, %20 : vector<2x8x8xf32>
    %22 = arith.truncf %21 : vector<2x8x8xf32> to vector<2x8x8xbf16>
    "tpu.trace_start"() <{level = 10 : i32, message = "gqk,gkd->gqd"}> : () -> ()
    %cst_16 = arith.constant dense<0.000000e+00> : vector<2x8x64xf32>
    %23 = tpu.matmul %22, %2, %cst_16 {dimension_numbers = #tpu.dot_dimension_numbers<[2], [1], [1], [2], [0, 0, 0, 1, 1, 2], [0], [0]>} : vector<2x8x8xbf16>, vector<2x8x64xbf16>, vector<2x8x64xf32> -> vector<2x8x64xf32>
    "tpu.trace_stop"() : () -> ()
    %24 = arith.truncf %23 : vector<2x8x64xf32> to vector<2x8x64xbf16>
    %c0_17 = arith.constant 0 : index
    %c0_18 = arith.constant 0 : index
    %c0_19 = arith.constant 0 : index
    %25 = vector.load %arg5[%c0_17, %c0_18, %c0_19] : memref<2x8x64xbf16, #tpu.memory_space<vmem>>, vector<2x8x64xbf16>
    tpu.vector_store %arg5[%c0_17, %c0_18, %c0_19], %24 {strides = array<i32>} : memref<2x8x64xbf16, #tpu.memory_space<vmem>>, vector<2x8x64xbf16>,
    %c0_20 = arith.constant 0 : index
    %c0_21 = arith.constant 0 : index
    %c0_22 = arith.constant 0 : index
    %26 = vector.load %arg6[%c0_20, %c0_21, %c0_22] : memref<2x8x8xf32, #tpu.memory_space<vmem>>, vector<2x8x8xf32>
    tpu.vector_store %arg6[%c0_20, %c0_21, %c0_22], %21 {strides = array<i32>} : memref<2x8x8xf32, #tpu.memory_space<vmem>>, vector<2x8x8xf32>,
    return
  }
  func.func @transform_0(%arg0: i32) -> (i32, i32, i32) {
    %c0_i32 = arith.constant 0 : i32
    %c0_i32_0 = arith.constant 0 : i32
    %c0_i32_1 = arith.constant 0 : i32
    return %arg0, %c0_i32, %c0_i32_0 : i32, i32, i32
  }
  func.func @transform_1(%arg0: i32) -> (i32, i32, i32) {
    %c0_i32 = arith.constant 0 : i32
    %c0_i32_0 = arith.constant 0 : i32
    %c0_i32_1 = arith.constant 0 : i32
    return %arg0, %c0_i32, %c0_i32_0 : i32, i32, i32
  }
  func.func @transform_2(%arg0: i32) -> (i32, i32, i32) {
    %c0_i32 = arith.constant 0 : i32
    %c0_i32_0 = arith.constant 0 : i32
    %c0_i32_1 = arith.constant 0 : i32
    return %arg0, %c0_i32, %c0_i32_0 : i32, i32, i32
  }
  func.func @transform_3(%arg0: i32) -> (i32, i32, i32) {
    %c0_i32 = arith.constant 0 : i32
    %c0_i32_0 = arith.constant 0 : i32
    %c0_i32_1 = arith.constant 0 : i32
    return %arg0, %c0_i32, %c0_i32_0 : i32, i32, i32
  }
  func.func @transform_4(%arg0: i32) -> (i32, i32, i32) {
    %c0_i32 = arith.constant 0 : i32
    %c0_i32_0 = arith.constant 0 : i32
    %c0_i32_1 = arith.constant 0 : i32
    return %arg0, %c0_i32, %c0_i32_0 : i32, i32, i32
  }
  func.func @transform_5(%arg0: i32) -> (i32, i32, i32) {
    %c0_i32 = arith.constant 0 : i32
    %c0_i32_0 = arith.constant 0 : i32
    %c0_i32_1 = arith.constant 0 : i32
    return %arg0, %c0_i32, %c0_i32_0 : i32, i32, i32
  }
}

module attributes {stable_mosaic.version = 11 : i64} {
  func.func @_linear_add_ln_kernel(%arg0: i32, %arg1: i32, %arg2: memref<16x128xbf16, #tpu.memory_space<vmem>>, %arg3: memref<128x32xbf16, #tpu.memory_space<vmem>>, %arg4: memref<1x32xf32, #tpu.memory_space<vmem>>, %arg5: memref<16x32xf32, #tpu.memory_space<vmem>>, %arg6: memref<16x32xf32, #tpu.memory_space<vmem>>, %arg7: memref<16x32xf32, #tpu.memory_space<vmem>>) attributes {dimension_semantics = [#tpu.dimension_semantics<parallel>, #tpu.dimension_semantics<arbitrary>], iteration_bounds = array<i64: 1, 1>, scalar_prefetch = 0 : i64, scratch_operands = 1 : i64, tpu.core_type = #tpu.core_type<tc>, window_params = [{transform_indices = @transform_0, window_bounds = array<i64: 16, 128>}, {transform_indices = @transform_1, window_bounds = array<i64: 128, 32>}, {pipeline_mode = #tpu.pipeline_mode<synchronous>, transform_indices = @transform_2, window_bounds = array<i64: 1, 32>}, {transform_indices = @transform_3, window_bounds = array<i64: 16, 32>}, {transform_indices = @transform_4, window_bounds = array<i64: 16, 32>}]} {
    %c0_i32 = arith.constant 0 : i32
    %0 = arith.cmpi eq, %arg1, %c0_i32 : i32
    %1 = arith.extui %0 : i1 to i32
    %c0_i32_0 = arith.constant 0 : i32
    %2 = arith.cmpi ne, %1, %c0_i32_0 : i32
    scf.if %2 {
      %cst_10 = arith.constant 0.000000e+00 : f32
      %12 = vector.broadcast %cst_10 : f32 to vector<16x32xf32>
      %c0_11 = arith.constant 0 : index
      %c0_12 = arith.constant 0 : index
      %13 = vector.load %arg7[%c0_11, %c0_12] : memref<16x32xf32, #tpu.memory_space<vmem>>, vector<16x32xf32>
      tpu.vector_store %arg7[%c0_11, %c0_12], %12 {strides = array<i32>} : memref<16x32xf32, #tpu.memory_space<vmem>>, vector<16x32xf32>,
    } else {
    }
    %c0 = arith.constant 0 : index
    %c0_1 = arith.constant 0 : index
    %3 = vector.load %arg7[%c0, %c0_1] : memref<16x32xf32, #tpu.memory_space<vmem>>, vector<16x32xf32>
    %c0_2 = arith.constant 0 : index
    %c0_3 = arith.constant 0 : index
    %4 = vector.load %arg2[%c0_2, %c0_3] : memref<16x128xbf16, #tpu.memory_space<vmem>>, vector<16x128xbf16>
    %c0_4 = arith.constant 0 : index
    %c0_5 = arith.constant 0 : index
    %5 = vector.load %arg3[%c0_4, %c0_5] : memref<128x32xbf16, #tpu.memory_space<vmem>>, vector<128x32xbf16>
    %cst = arith.constant dense<0.000000e+00> : vector<16x32xf32>
    %6 = tpu.matmul %4, %5, %cst {dimension_numbers = #tpu.dot_dimension_numbers<[1], [0], [0], [1], [0, 0, 1, 1], [], []>} : vector<16x128xbf16>, vector<128x32xbf16>, vector<16x32xf32> -> vector<16x32xf32>
    %7 = arith.addf %3, %6 : vector<16x32xf32>
    %c0_6 = arith.constant 0 : index
    %c0_7 = arith.constant 0 : index
    %8 = vector.load %arg7[%c0_6, %c0_7] : memref<16x32xf32, #tpu.memory_space<vmem>>, vector<16x32xf32>
    tpu.vector_store %arg7[%c0_6, %c0_7], %7 {strides = array<i32>} : memref<16x32xf32, #tpu.memory_space<vmem>>, vector<16x32xf32>,
    %c0_i32_8 = arith.constant 0 : i32
    %9 = arith.cmpi eq, %arg1, %c0_i32_8 : i32
    %10 = arith.extui %9 : i1 to i32
    %c0_i32_9 = arith.constant 0 : i32
    %11 = arith.cmpi ne, %10, %c0_i32_9 : i32
    scf.if %11 {
      %c0_10 = arith.constant 0 : index
      %c0_11 = arith.constant 0 : index
      %12 = vector.load %arg7[%c0_10, %c0_11] : memref<16x32xf32, #tpu.memory_space<vmem>>, vector<16x32xf32>
      %c0_12 = arith.constant 0 : index
      %c0_13 = arith.constant 0 : index
      %13 = vector.load %arg4[%c0_12, %c0_13] : memref<1x32xf32, #tpu.memory_space<vmem>>, vector<1x32xf32>
      %14 = vector.broadcast %13 : vector<1x32xf32> to vector<16x32xf32>
      %15 = arith.addf %12, %14 : vector<16x32xf32>
      %c0_14 = arith.constant 0 : index
      %c0_15 = arith.constant 0 : index
      %16 = vector.load %arg5[%c0_14, %c0_15] : memref<16x32xf32, #tpu.memory_space<vmem>>, vector<16x32xf32>
      %17 = arith.addf %15, %16 : vector<16x32xf32>
      %cst_16 = arith.constant dense<0.000000e+00> : vector<16xf32>
      %18 = vector.multi_reduction <add>, %17, %cst_16 [1] : vector<16x32xf32> to vector<16xf32>
      %19 = vector.shape_cast %18 : vector<16xf32> to vector<16x1xf32>
      %cst_17 = arith.constant 3.200000e+01 : f32
      %20 = vector.broadcast %cst_17 : f32 to vector<16x1xf32>
      %21 = arith.divf %19, %20 : vector<16x1xf32>
      %22 = vector.broadcast %21 : vector<16x1xf32> to vector<16x32xf32>
      %23 = arith.subf %17, %22 : vector<16x32xf32>
      %24 = arith.mulf %23, %23 : vector<16x32xf32>
      %cst_18 = arith.constant dense<0.000000e+00> : vector<16xf32>
      %25 = vector.multi_reduction <add>, %24, %cst_18 [1] : vector<16x32xf32> to vector<16xf32>
      %26 = vector.shape_cast %25 : vector<16xf32> to vector<16x1xf32>
      %cst_19 = arith.constant 3.200000e+01 : f32
      %27 = vector.broadcast %cst_19 : f32 to vector<16x1xf32>
      %28 = arith.divf %26, %27 : vector<16x1xf32>
      %cst_20 = arith.constant 9.99999974E-6 : f32
      %29 = vector.broadcast %cst_20 : f32 to vector<16x1xf32>
      %30 = arith.addf %28, %29 : vector<16x1xf32>
      %31 = math.rsqrt %30 : vector<16x1xf32>
      %32 = vector.broadcast %31 : vector<16x1xf32> to vector<16x32xf32>
      %33 = arith.mulf %23, %32 : vector<16x32xf32>
      %c0_21 = arith.constant 0 : index
      %c0_22 = arith.constant 0 : index
      %34 = vector.load %arg6[%c0_21, %c0_22] : memref<16x32xf32, #tpu.memory_space<vmem>>, vector<16x32xf32>
      tpu.vector_store %arg6[%c0_21, %c0_22], %33 {strides = array<i32>} : memref<16x32xf32, #tpu.memory_space<vmem>>, vector<16x32xf32>,
    } else {
    }
    return
  }
  func.func @transform_0(%arg0: i32, %arg1: i32) -> (i32, i32) {
    %c0_i32 = arith.constant 0 : i32
    return %arg0, %arg1 : i32, i32
  }
  func.func @transform_1(%arg0: i32, %arg1: i32) -> (i32, i32) {
    %c0_i32 = arith.constant 0 : i32
    %c0_i32_0 = arith.constant 0 : i32
    return %arg1, %c0_i32 : i32, i32
  }
  func.func @transform_2(%arg0: i32, %arg1: i32) -> (i32, i32) {
    %c0_i32 = arith.constant 0 : i32
    %c0_i32_0 = arith.constant 0 : i32
    %c0_i32_1 = arith.constant 0 : i32
    return %c0_i32, %c0_i32_0 : i32, i32
  }
  func.func @transform_3(%arg0: i32, %arg1: i32) -> (i32, i32) {
    %c0_i32 = arith.constant 0 : i32
    %c0_i32_0 = arith.constant 0 : i32
    return %arg0, %c0_i32 : i32, i32
  }
  func.func @transform_4(%arg0: i32, %arg1: i32) -> (i32, i32) {
    %c0_i32 = arith.constant 0 : i32
    %c0_i32_0 = arith.constant 0 : i32
    return %arg0, %c0_i32 : i32, i32
  }
}

module attributes {stable_mosaic.version = 11 : i64} {
  func.func @_ffn_kernel(%arg0: i32, %arg1: i32, %arg2: memref<16x32xf32, #tpu.memory_space<vmem>>, %arg3: memref<32x1024xbf16, #tpu.memory_space<vmem>>, %arg4: memref<1x1024xf32, #tpu.memory_space<vmem>>, %arg5: memref<1024x32xbf16, #tpu.memory_space<vmem>>, %arg6: memref<1x32xf32, #tpu.memory_space<vmem>>, %arg7: memref<16x32xf32, #tpu.memory_space<vmem>>, %arg8: memref<16x32xf32, #tpu.memory_space<vmem>>) attributes {dimension_semantics = [#tpu.dimension_semantics<parallel>, #tpu.dimension_semantics<arbitrary>], iteration_bounds = array<i64: 1, 2>, scalar_prefetch = 0 : i64, scratch_operands = 1 : i64, tpu.core_type = #tpu.core_type<tc>, window_params = [{transform_indices = @transform_0, window_bounds = array<i64: 16, 32>}, {transform_indices = @transform_1, window_bounds = array<i64: 32, 1024>}, {transform_indices = @transform_2, window_bounds = array<i64: 1, 1024>}, {transform_indices = @transform_3, window_bounds = array<i64: 1024, 32>}, {pipeline_mode = #tpu.pipeline_mode<synchronous>, transform_indices = @transform_4, window_bounds = array<i64: 1, 32>}, {transform_indices = @transform_5, window_bounds = array<i64: 16, 32>}]} {
    %c0_i32 = arith.constant 0 : i32
    %0 = arith.cmpi eq, %arg1, %c0_i32 : i32
    %1 = arith.extui %0 : i1 to i32
    %c0_i32_0 = arith.constant 0 : i32
    %2 = arith.cmpi ne, %1, %c0_i32_0 : i32
    scf.if %2 {
      %cst_15 = arith.constant 0.000000e+00 : f32
      %21 = vector.broadcast %cst_15 : f32 to vector<16x32xf32>
      %c0_16 = arith.constant 0 : index
      %c0_17 = arith.constant 0 : index
      %22 = vector.load %arg8[%c0_16, %c0_17] : memref<16x32xf32, #tpu.memory_space<vmem>>, vector<16x32xf32>
      tpu.vector_store %arg8[%c0_16, %c0_17], %21 {strides = array<i32>} : memref<16x32xf32, #tpu.memory_space<vmem>>, vector<16x32xf32>,
    } else {
    }
    %c0 = arith.constant 0 : index
    %c0_1 = arith.constant 0 : index
    %3 = vector.load %arg2[%c0, %c0_1] : memref<16x32xf32, #tpu.memory_space<vmem>>, vector<16x32xf32>
    %4 = arith.truncf %3 : vector<16x32xf32> to vector<16x32xbf16>
    %c0_2 = arith.constant 0 : index
    %c0_3 = arith.constant 0 : index
    %5 = vector.load %arg3[%c0_2, %c0_3] : memref<32x1024xbf16, #tpu.memory_space<vmem>>, vector<32x1024xbf16>
    %cst = arith.constant dense<0.000000e+00> : vector<16x1024xf32>
    %6 = tpu.matmul %4, %5, %cst {dimension_numbers = #tpu.dot_dimension_numbers<[1], [0], [0], [1], [0, 0, 1, 1], [], []>} : vector<16x32xbf16>, vector<32x1024xbf16>, vector<16x1024xf32> -> vector<16x1024xf32>
    %c0_4 = arith.constant 0 : index
    %c0_5 = arith.constant 0 : index
    %7 = vector.load %arg4[%c0_4, %c0_5] : memref<1x1024xf32, #tpu.memory_space<vmem>>, vector<1x1024xf32>
    %8 = vector.broadcast %7 : vector<1x1024xf32> to vector<16x1024xf32>
    %9 = arith.addf %6, %8 : vector<16x1024xf32>
    %cst_6 = arith.constant 0.000000e+00 : f32
    %10 = vector.broadcast %cst_6 : f32 to vector<16x1024xf32>
    %11 = arith.maximumf %9, %10 : vector<16x1024xf32>
    %c0_7 = arith.constant 0 : index
    %c0_8 = arith.constant 0 : index
    %12 = vector.load %arg8[%c0_7, %c0_8] : memref<16x32xf32, #tpu.memory_space<vmem>>, vector<16x32xf32>
    %13 = arith.truncf %11 : vector<16x1024xf32> to vector<16x1024xbf16>
    %c0_9 = arith.constant 0 : index
    %c0_10 = arith.constant 0 : index
    %14 = vector.load %arg5[%c0_9, %c0_10] : memref<1024x32xbf16, #tpu.memory_space<vmem>>, vector<1024x32xbf16>
    %cst_11 = arith.constant dense<0.000000e+00> : vector<16x32xf32>
    %15 = tpu.matmul %13, %14, %cst_11 {dimension_numbers = #tpu.dot_dimension_numbers<[1], [0], [0], [1], [0, 0, 1, 1], [], []>} : vector<16x1024xbf16>, vector<1024x32xbf16>, vector<16x32xf32> -> vector<16x32xf32>
    %16 = arith.addf %12, %15 : vector<16x32xf32>
    %c0_12 = arith.constant 0 : index
    %c0_13 = arith.constant 0 : index
    %17 = vector.load %arg8[%c0_12, %c0_13] : memref<16x32xf32, #tpu.memory_space<vmem>>, vector<16x32xf32>
    tpu.vector_store %arg8[%c0_12, %c0_13], %16 {strides = array<i32>} : memref<16x32xf32, #tpu.memory_space<vmem>>, vector<16x32xf32>,
    %c1_i32 = arith.constant 1 : i32
    %18 = arith.cmpi eq, %arg1, %c1_i32 : i32
    %19 = arith.extui %18 : i1 to i32
    %c0_i32_14 = arith.constant 0 : i32
    %20 = arith.cmpi ne, %19, %c0_i32_14 : i32
    scf.if %20 {
      %c0_15 = arith.constant 0 : index
      %c0_16 = arith.constant 0 : index
      %21 = vector.load %arg8[%c0_15, %c0_16] : memref<16x32xf32, #tpu.memory_space<vmem>>, vector<16x32xf32>
      %c0_17 = arith.constant 0 : index
      %c0_18 = arith.constant 0 : index
      %22 = vector.load %arg6[%c0_17, %c0_18] : memref<1x32xf32, #tpu.memory_space<vmem>>, vector<1x32xf32>
      %23 = vector.broadcast %22 : vector<1x32xf32> to vector<16x32xf32>
      %24 = arith.addf %21, %23 : vector<16x32xf32>
      %c0_19 = arith.constant 0 : index
      %c0_20 = arith.constant 0 : index
      %25 = vector.load %arg2[%c0_19, %c0_20] : memref<16x32xf32, #tpu.memory_space<vmem>>, vector<16x32xf32>
      %26 = arith.addf %24, %25 : vector<16x32xf32>
      %cst_21 = arith.constant dense<0.000000e+00> : vector<16xf32>
      %27 = vector.multi_reduction <add>, %26, %cst_21 [1] : vector<16x32xf32> to vector<16xf32>
      %28 = vector.shape_cast %27 : vector<16xf32> to vector<16x1xf32>
      %cst_22 = arith.constant 3.200000e+01 : f32
      %29 = vector.broadcast %cst_22 : f32 to vector<16x1xf32>
      %30 = arith.divf %28, %29 : vector<16x1xf32>
      %31 = vector.broadcast %30 : vector<16x1xf32> to vector<16x32xf32>
      %32 = arith.subf %26, %31 : vector<16x32xf32>
      %33 = arith.mulf %32, %32 : vector<16x32xf32>
      %cst_23 = arith.constant dense<0.000000e+00> : vector<16xf32>
      %34 = vector.multi_reduction <add>, %33, %cst_23 [1] : vector<16x32xf32> to vector<16xf32>
      %35 = vector.shape_cast %34 : vector<16xf32> to vector<16x1xf32>
      %cst_24 = arith.constant 3.200000e+01 : f32
      %36 = vector.broadcast %cst_24 : f32 to vector<16x1xf32>
      %37 = arith.divf %35, %36 : vector<16x1xf32>
      %cst_25 = arith.constant 9.99999974E-6 : f32
      %38 = vector.broadcast %cst_25 : f32 to vector<16x1xf32>
      %39 = arith.addf %37, %38 : vector<16x1xf32>
      %40 = math.rsqrt %39 : vector<16x1xf32>
      %41 = vector.broadcast %40 : vector<16x1xf32> to vector<16x32xf32>
      %42 = arith.mulf %32, %41 : vector<16x32xf32>
      %c0_26 = arith.constant 0 : index
      %c0_27 = arith.constant 0 : index
      %43 = vector.load %arg7[%c0_26, %c0_27] : memref<16x32xf32, #tpu.memory_space<vmem>>, vector<16x32xf32>
      tpu.vector_store %arg7[%c0_26, %c0_27], %42 {strides = array<i32>} : memref<16x32xf32, #tpu.memory_space<vmem>>, vector<16x32xf32>,
    } else {
    }
    return
  }
  func.func @transform_0(%arg0: i32, %arg1: i32) -> (i32, i32) {
    %c0_i32 = arith.constant 0 : i32
    %c0_i32_0 = arith.constant 0 : i32
    return %arg0, %c0_i32 : i32, i32
  }
  func.func @transform_1(%arg0: i32, %arg1: i32) -> (i32, i32) {
    %c0_i32 = arith.constant 0 : i32
    %c0_i32_0 = arith.constant 0 : i32
    return %c0_i32, %arg1 : i32, i32
  }
  func.func @transform_2(%arg0: i32, %arg1: i32) -> (i32, i32) {
    %c0_i32 = arith.constant 0 : i32
    %c0_i32_0 = arith.constant 0 : i32
    return %c0_i32, %arg1 : i32, i32
  }
  func.func @transform_3(%arg0: i32, %arg1: i32) -> (i32, i32) {
    %c0_i32 = arith.constant 0 : i32
    %c0_i32_0 = arith.constant 0 : i32
    return %arg1, %c0_i32 : i32, i32
  }
  func.func @transform_4(%arg0: i32, %arg1: i32) -> (i32, i32) {
    %c0_i32 = arith.constant 0 : i32
    %c0_i32_0 = arith.constant 0 : i32
    %c0_i32_1 = arith.constant 0 : i32
    return %c0_i32, %c0_i32_0 : i32, i32
  }
  func.func @transform_5(%arg0: i32, %arg1: i32) -> (i32, i32) {
    %c0_i32 = arith.constant 0 : i32
    %c0_i32_0 = arith.constant 0 : i32
    return %arg0, %c0_i32 : i32, i32
  }
}

module attributes {stable_mosaic.version = 11 : i64} {
  func.func @_ffn_kernel(%arg0: i32, %arg1: i32, %arg2: memref<16x32xf32, #tpu.memory_space<vmem>>, %arg3: memref<32x1024xbf16, #tpu.memory_space<vmem>>, %arg4: memref<1x1024xf32, #tpu.memory_space<vmem>>, %arg5: memref<1024x32xbf16, #tpu.memory_space<vmem>>, %arg6: memref<1x32xf32, #tpu.memory_space<vmem>>, %arg7: memref<16x32xf32, #tpu.memory_space<vmem>>, %arg8: memref<16x32xf32, #tpu.memory_space<vmem>>) attributes {dimension_semantics = [#tpu.dimension_semantics<parallel>, #tpu.dimension_semantics<arbitrary>], iteration_bounds = array<i64: 1, 2>, scalar_prefetch = 0 : i64, scratch_operands = 1 : i64, tpu.core_type = #tpu.core_type<tc>, window_params = [{transform_indices = @transform_0, window_bounds = array<i64: 16, 32>}, {transform_indices = @transform_1, window_bounds = array<i64: 32, 1024>}, {transform_indices = @transform_2, window_bounds = array<i64: 1, 1024>}, {transform_indices = @transform_3, window_bounds = array<i64: 1024, 32>}, {pipeline_mode = #tpu.pipeline_mode<synchronous>, transform_indices = @transform_4, window_bounds = array<i64: 1, 32>}, {transform_indices = @transform_5, window_bounds = array<i64: 16, 32>}]} {
    %c0_i32 = arith.constant 0 : i32
    %0 = arith.cmpi eq, %arg1, %c0_i32 : i32
    %1 = arith.extui %0 : i1 to i32
    %c0_i32_0 = arith.constant 0 : i32
    %2 = arith.cmpi ne, %1, %c0_i32_0 : i32
    scf.if %2 {
      %cst_15 = arith.constant 0.000000e+00 : f32
      %21 = vector.broadcast %cst_15 : f32 to vector<16x32xf32>
      %c0_16 = arith.constant 0 : index
      %c0_17 = arith.constant 0 : index
      %22 = vector.load %arg8[%c0_16, %c0_17] : memref<16x32xf32, #tpu.memory_space<vmem>>, vector<16x32xf32>
      tpu.vector_store %arg8[%c0_16, %c0_17], %21 {strides = array<i32>} : memref<16x32xf32, #tpu.memory_space<vmem>>, vector<16x32xf32>,
    } else {
    }
    %c0 = arith.constant 0 : index
    %c0_1 = arith.constant 0 : index
    %3 = vector.load %arg2[%c0, %c0_1] : memref<16x32xf32, #tpu.memory_space<vmem>>, vector<16x32xf32>
    %4 = arith.truncf %3 : vector<16x32xf32> to vector<16x32xbf16>
    %c0_2 = arith.constant 0 : index
    %c0_3 = arith.constant 0 : index
    %5 = vector.load %arg3[%c0_2, %c0_3] : memref<32x1024xbf16, #tpu.memory_space<vmem>>, vector<32x1024xbf16>
    %cst = arith.constant dense<0.000000e+00> : vector<16x1024xf32>
    %6 = tpu.matmul %4, %5, %cst {dimension_numbers = #tpu.dot_dimension_numbers<[1], [0], [0], [1], [0, 0, 1, 1], [], []>} : vector<16x32xbf16>, vector<32x1024xbf16>, vector<16x1024xf32> -> vector<16x1024xf32>
    %c0_4 = arith.constant 0 : index
    %c0_5 = arith.constant 0 : index
    %7 = vector.load %arg4[%c0_4, %c0_5] : memref<1x1024xf32, #tpu.memory_space<vmem>>, vector<1x1024xf32>
    %8 = vector.broadcast %7 : vector<1x1024xf32> to vector<16x1024xf32>
    %9 = arith.addf %6, %8 : vector<16x1024xf32>
    %cst_6 = arith.constant 0.000000e+00 : f32
    %10 = vector.broadcast %cst_6 : f32 to vector<16x1024xf32>
    %11 = arith.maximumf %9, %10 : vector<16x1024xf32>
    %c0_7 = arith.constant 0 : index
    %c0_8 = arith.constant 0 : index
    %12 = vector.load %arg8[%c0_7, %c0_8] : memref<16x32xf32, #tpu.memory_space<vmem>>, vector<16x32xf32>
    %13 = arith.truncf %11 : vector<16x1024xf32> to vector<16x1024xbf16>
    %c0_9 = arith.constant 0 : index
    %c0_10 = arith.constant 0 : index
    %14 = vector.load %arg5[%c0_9, %c0_10] : memref<1024x32xbf16, #tpu.memory_space<vmem>>, vector<1024x32xbf16>
    %cst_11 = arith.constant dense<0.000000e+00> : vector<16x32xf32>
    %15 = tpu.matmul %13, %14, %cst_11 {dimension_numbers = #tpu.dot_dimension_numbers<[1], [0], [0], [1], [0, 0, 1, 1], [], []>} : vector<16x1024xbf16>, vector<1024x32xbf16>, vector<16x32xf32> -> vector<16x32xf32>
    %16 = arith.addf %12, %15 : vector<16x32xf32>
    %c0_12 = arith.constant 0 : index
    %c0_13 = arith.constant 0 : index
    %17 = vector.load %arg8[%c0_12, %c0_13] : memref<16x32xf32, #tpu.memory_space<vmem>>, vector<16x32xf32>
    tpu.vector_store %arg8[%c0_12, %c0_13], %16 {strides = array<i32>} : memref<16x32xf32, #tpu.memory_space<vmem>>, vector<16x32xf32>,
    %c1_i32 = arith.constant 1 : i32
    %18 = arith.cmpi eq, %arg1, %c1_i32 : i32
    %19 = arith.extui %18 : i1 to i32
    %c0_i32_14 = arith.constant 0 : i32
    %20 = arith.cmpi ne, %19, %c0_i32_14 : i32
    scf.if %20 {
      %c0_15 = arith.constant 0 : index
      %c0_16 = arith.constant 0 : index
      %21 = vector.load %arg8[%c0_15, %c0_16] : memref<16x32xf32, #tpu.memory_space<vmem>>, vector<16x32xf32>
      %c0_17 = arith.constant 0 : index
      %c0_18 = arith.constant 0 : index
      %22 = vector.load %arg6[%c0_17, %c0_18] : memref<1x32xf32, #tpu.memory_space<vmem>>, vector<1x32xf32>
      %23 = vector.broadcast %22 : vector<1x32xf32> to vector<16x32xf32>
      %24 = arith.addf %21, %23 : vector<16x32xf32>
      %c0_19 = arith.constant 0 : index
      %c0_20 = arith.constant 0 : index
      %25 = vector.load %arg2[%c0_19, %c0_20] : memref<16x32xf32, #tpu.memory_space<vmem>>, vector<16x32xf32>
      %26 = arith.addf %24, %25 : vector<16x32xf32>
      %cst_21 = arith.constant dense<0.000000e+00> : vector<16xf32>
      %27 = vector.multi_reduction <add>, %26, %cst_21 [1] : vector<16x32xf32> to vector<16xf32>
      %28 = vector.shape_cast %27 : vector<16xf32> to vector<16x1xf32>
      %cst_22 = arith.constant 3.200000e+01 : f32
      %29 = vector.broadcast %cst_22 : f32 to vector<16x1xf32>
      %30 = arith.divf %28, %29 : vector<16x1xf32>
      %31 = vector.broadcast %30 : vector<16x1xf32> to vector<16x32xf32>
      %32 = arith.subf %26, %31 : vector<16x32xf32>
      %33 = arith.mulf %32, %32 : vector<16x32xf32>
      %cst_23 = arith.constant dense<0.000000e+00> : vector<16xf32>
      %34 = vector.multi_reduction <add>, %33, %cst_23 [1] : vector<16x32xf32> to vector<16xf32>
      %35 = vector.shape_cast %34 : vector<16xf32> to vector<16x1xf32>
      %cst_24 = arith.constant 3.200000e+01 : f32
      %36 = vector.broadcast %cst_24 : f32 to vector<16x1xf32>
      %37 = arith.divf %35, %36 : vector<16x1xf32>
      %cst_25 = arith.constant 9.99999974E-6 : f32
      %38 = vector.broadcast %cst_25 : f32 to vector<16x1xf32>
      %39 = arith.addf %37, %38 : vector<16x1xf32>
      %40 = math.rsqrt %39 : vector<16x1xf32>
      %41 = vector.broadcast %40 : vector<16x1xf32> to vector<16x32xf32>
      %42 = arith.mulf %32, %41 : vector<16x32xf32>
      %c0_26 = arith.constant 0 : index
      %c0_27 = arith.constant 0 : index
      %43 = vector.load %arg7[%c0_26, %c0_27] : memref<16x32xf32, #tpu.memory_space<vmem>>, vector<16x32xf32>
      tpu.vector_store %arg7[%c0_26, %c0_27], %42 {strides = array<i32>} : memref<16x32xf32, #tpu.memory_space<vmem>>, vector<16x32xf32>,
    } else {
    }
    return
  }
  func.func @transform_0(%arg0: i32, %arg1: i32) -> (i32, i32) {
    %c0_i32 = arith.constant 0 : i32
    %c0_i32_0 = arith.constant 0 : i32
    return %arg0, %c0_i32 : i32, i32
  }
  func.func @transform_1(%arg0: i32, %arg1: i32) -> (i32, i32) {
    %c0_i32 = arith.constant 0 : i32
    %c0_i32_0 = arith.constant 0 : i32
    return %c0_i32, %arg1 : i32, i32
  }
  func.func @transform_2(%arg0: i32, %arg1: i32) -> (i32, i32) {
    %c0_i32 = arith.constant 0 : i32
    %c0_i32_0 = arith.constant 0 : i32
    return %c0_i32, %arg1 : i32, i32
  }
  func.func @transform_3(%arg0: i32, %arg1: i32) -> (i32, i32) {
    %c0_i32 = arith.constant 0 : i32
    %c0_i32_0 = arith.constant 0 : i32
    return %arg1, %c0_i32 : i32, i32
  }
  func.func @transform_4(%arg0: i32, %arg1: i32) -> (i32, i32) {
    %c0_i32 = arith.constant 0 : i32
    %c0_i32_0 = arith.constant 0 : i32
    %c0_i32_1 = arith.constant 0 : i32
    return %c0_i32, %c0_i32_0 : i32, i32
  }
  func.func @transform_5(%arg0: i32, %arg1: i32) -> (i32, i32) {
    %c0_i32 = arith.constant 0 : i32
    %c0_i32_0 = arith.constant 0 : i32
    return %arg0, %c0_i32 : i32, i32
  }
}

</mosaic_0001>

<bundles_post_ra>
// kernel: attr_encoder_forward.10
= control target key start
LH: loop header
LB: loop body
LE: loop exit
PB: predicated region body
PF: predicated region fallthrough
CT: control target
= control target key end

     0   :  { %vm22_vm0 = vcmask 261120   ;;  %v250_v0 = vmov 0.0   ;;  %vm251_vm1 = vmmov 0   ;;  %s329_s1 = inlined_call_operand.vmem [shape: bf16[128,32], index: 1, kind: input, shape index: {}]   ;;  %s330_s0 = inlined_call_operand.vmem [shape: bf16[16,128], index: 0, kind: input, shape index: {}]   ;;  %s331_s2 = inlined_call_operand.vmem [shape: f32[1,32], index: 2, kind: input, shape index: {}]   ;;  %s332_s3 = inlined_call_operand.vmem [shape: f32[16,32], index: 3, kind: input, shape index: {}]   ;;  %s333_s4 = inlined_call_operand.vmem [shape: f32[16,32], index: 4, kind: output, shape index: {}]  }
   0x1   :  { %215 = vmatprep.subr.bf16.mxu0 %v250_v0  ;;  %v237_v1 = vld [vmem:[%s329_s1 + $0x38] sm:$0xff]   ;;  %231 = vmatprep.mubr.msk.bf16.mxu0 %vm251_vm1, %v250_v0  ;;  %23 = vst.msk [vmem:[#allocation2] sm:$0xff] %vm22_vm0, %v250_v0  ;;  %24 = vst.msk [vmem:[#allocation2 + $0x8] sm:$0xff] %vm22_vm0, %v250_v0  ;;  %v238_v2 = vld [vmem:[%s329_s1 + $0x30] sm:$0xff]  }
   0x2   :  { %216 = vmatpush3.bf16.msra.mxu0 %v237_v1  ;;  %v239_v3 = vld [vmem:[%s329_s1 + $0x28] sm:$0xff]   ;;  %v240_v4 = vld [vmem:[%s329_s1 + $0x20] sm:$0xff]   ;;  %v241_v5 = vld [vmem:[%s329_s1 + $0x18] sm:$0xff]  }
   0x3   :  { %217 = vmatprep.subr.bf16.mxu0 %v250_v0  ;;  %v242_v6 = vld [vmem:[%s329_s1 + $0x10] sm:$0xff]   ;;  %v243_v7 = vld [vmem:[%s329_s1 + $0x8] sm:$0xff]   ;;  %v244_v8 = vld [vmem:[%s329_s1] sm:$0xff]  }
   0x4   :  { %v245_v9 = vld [vmem:[%s330_s0] sm:$0xff]   ;;  %v160_v24 = vld [vmem:[%s332_s3 + $0x8] sm:$0xff] }
   0x5   :  { %v205_v18 = vld [vmem:[%s331_s2] ss:$0 sm:$0xff] }
   0x6   :  { %218 = vmatpush3.bf16.msra.mxu0 %v238_v2  ;;  %v159_v20 = vld [vmem:[%s332_s3] sm:$0xff] }
   0x7   :  { %219 = vmatprep.subr.bf16.mxu0 %v250_v0 }
   0x8   :  { %v25_v10 = vld [vmem:[#allocation2] sm:$0xff]  ;;  %v26_v14 = vld [vmem:[#allocation2 + $0x8] sm:$0xff] }
   0xa   :  { %220 = vmatpush3.bf16.msra.mxu0 %v239_v3 }
   0xb   :  { %221 = vmatprep.subr.bf16.mxu0 %v250_v0 }
   0xe   :  { %222 = vmatpush3.bf16.msra.mxu0 %v240_v4 }
   0xf   :  { %223 = vmatprep.subr.bf16.mxu0 %v250_v0 }
  0x12   :  { %224 = vmatpush3.bf16.msra.mxu0 %v241_v5 }
  0x13   :  { %225 = vmatprep.subr.bf16.mxu0 %v250_v0 }
  0x16   :  { %226 = vmatpush3.bf16.msra.mxu0 %v242_v6 }
  0x17   :  { %227 = vmatprep.subr.bf16.mxu0 %v250_v0 }
  0x1a   :  { %228 = vmatpush3.bf16.msra.mxu0 %v243_v7 }
  0x1b   :  { %229 = vmatprep.subr.bf16.mxu0 %v250_v0 }
  0x1e   :  { %230 = vmatpush3.bf16.msra.mxu0 %v244_v8 }
  0x21   :  { %232 = vmatmul.mubr.bf16.vlgmr.msra.gmra.mxu0 %v245_v9 }
  0xe1   :  { %v133_v11 = vpop.f32.mrf.mxu0 }
  0xe2   :  { %v140_v12 = vadd.f32 %v133_v11, %v25_v10 }
  0xe3   :  { %v233_v13 = vpop.f32.mrf.mxu0 }
  0xe4   :  { %143 = vst.msk [vmem:[#allocation2] sm:$0xff] %vm22_vm0, %v140_v12 }
  0xe5   :  { %v136_v15 = vpop.f32.mrf.mxu0 }
  0xe6   :  { %v141_v16 = vadd.f32 %v136_v15, %v26_v14 }
  0xe7   :  { %v234_v17 = vpop.f32.mrf.mxu0 }
  0xe8   :  { %144 = vst.msk [vmem:[#allocation2 + $0x8] sm:$0xff] %vm22_vm0, %v141_v16 }
  0xeb   :  { %v148_v19 = vld [vmem:[#allocation2] sm:$0xff] }
  0xec   :  { %v157_v21 = vadd.f32 %v205_v18, %v148_v19 }
  0xee   :  { %v161_v22 = vadd.f32 %v159_v20, %v157_v21 }
  0xef   :  { %v149_v23 = vld [vmem:[#allocation2 + $0x8] sm:$0xff] }
  0xf0   :  { %v163_v25 = vsel %vm22_vm0, %v161_v22, 0.0  ;;  %v158_v26 = vadd.f32 %v205_v18, %v149_v23 }
  0xf1   :  { %164 = vadd.xlane.f32.xlu0 %v163_v25 }
  0xf2   :  { %v162_v27 = vadd.f32 %v160_v24, %v158_v26 }
  0xf4   :  { %v166_v28 = vsel %vm22_vm0, %v162_v27, 0.0 }
  0xf5   :  { %167 = vadd.xlane.f32.xlu0 %v166_v28 }
 0x17a   :  { %v165_v29 = vpop.xlane.xlu0 %164 }
 0x17b   :  { %v170_v30 = vmul.f32 0.03125, %v165_v29 }
 0x17d   :  { %v172_v31 = vsub.f32 %v161_v22, %v170_v30 }
 0x17e   :  { %v168_v32 = vpop.xlane.xlu0 %167 }
 0x17f   :  { %v171_v33 = vmul.f32 0.03125, %v168_v32  ;;  %v174_v34 = vmul.f32 %v172_v31, %v172_v31 }
 0x181   :  { %v173_v35 = vsub.f32 %v162_v27, %v171_v33  ;;  %v176_v36 = vsel %vm22_vm0, %v174_v34, 0.0 }
 0x182   :  { %177 = vadd.xlane.f32.xlu1 %v176_v36 }
 0x183   :  { %v175_v37 = vmul.f32 %v173_v35, %v173_v35 }
 0x185   :  { %v179_v38 = vsel %vm22_vm0, %v175_v37, 0.0 }
 0x186   :  { %180 = vadd.xlane.f32.xlu1 %v179_v38 }
 0x20b   :  { %v178_v39 = vpop.xlane.xlu1 %177 }
 0x20c   :  { %v182_v40 = vmul.f32 0.03125, %v178_v39 }
 0x20e   :  { %v184_v41 = vadd.f32 1e-05, %v182_v40 }
 0x20f   :  { %v181_v42 = vpop.xlane.xlu1 %180 }
 0x210   :  { %246 = vrsqrt.f32 %v184_v41  ;;  %v183_v43 = vmul.f32 0.03125, %v181_v42 }
 0x212   :  { %v185_v44 = vadd.f32 1e-05, %v183_v43 }
 0x214   :  { %248 = vrsqrt.f32 %v185_v44 }
 0x21d   :  { %v247_v45 = vpop.eup %246 }
 0x21e   :  { %v188_v46 = vmul.f32 %v247_v45, %v172_v31 }
 0x220   :  { %190 = vst.msk [vmem:[%s333_s4] sm:$0xff] %vm22_vm0, %v188_v46 }
 0x221   :  { %v249_v47 = vpop.eup %248 }
 0x222   :  { %v189_v48 = vmul.f32 %v249_v47, %v173_v35 }
 0x224   :  { %191 = vst.msk [vmem:[%s333_s4 + $0x8] sm:$0xff] %vm22_vm0, %v189_v48 }

// kernel: attr_encoder_forward.8
= control target key start
LH: loop header
LB: loop body
LE: loop exit
PB: predicated region body
PF: predicated region fallthrough
CT: control target
= control target key end

     0   :  { %v278_v0 = vmov 0.0   ;;  %vm279_vm0 = vmmov 0   ;;  %v280_v3 = vmov 0   ;;  %vm78_vm1 = vcmask 261120   ;;  %s337_s1 = inlined_call_operand.vmem [shape: bf16[32,384], index: 1, kind: input, shape index: {}]   ;;  %s338_s0 = inlined_call_operand.vmem [shape: bf16[16,32], index: 0, kind: input, shape index: {}]   ;;  %s339_s2 = inlined_call_operand.vmem [shape: f32[1,384], index: 2, kind: input, shape index: {}]   ;;  %s340_s3 = inlined_call_operand.vmem [shape: bf16[16,384], index: 3, kind: output, shape index: {}]  }
   0x1   :  { %258 = vmatprep.subr.bf16.mxu1 %v278_v0  ;;  %v269_v1 = vld [vmem:[%s337_s1 + $0x1c] ss:$12 sps:$4 sm:$0xff]   ;;  %262 = vmatprep.mubr.msk.bf16.mxu1 %vm279_vm0, %v278_v0  ;;  %v271_v2 = vld [vmem:[%s337_s1 + $0x20] ss:$12 sps:$4 sm:$0xff]   ;;  %v272_v4 = vld [vmem:[%s337_s1 + $0x18] ss:$12 sps:$4 sm:$0xff]   ;;  %v189_v9 = vlaneseq }
   0x2   :  { %114 = vmatprep.mubr.bf16.mxu0 %v280_v3  ;;  %94 = vmatprep.subr.bf16.mxu0 %v269_v1  ;;  %v273_v5 = vld [vmem:[%s337_s1 + $0x4] ss:$12 sps:$4 sm:$0xff]   ;;  %v275_v6 = vld [vmem:[%s337_s1 + $0x8] ss:$12 sps:$4 sm:$0xff]   ;;  %v276_v7 = vld [vmem:[%s337_s1] ss:$12 sps:$4 sm:$0xff]  }
   0x3   :  { %259 = vmatpush3.bf16.msra.mxu1 %v271_v2  ;;  %95 = vmatpush1.bf16.msra.mxu0 %v272_v4  ;;  %v277_v8 = vld [vmem:[%s338_s0] sm:$0xff]   ;;  %v190_v10 = vshrl.u32 %v189_v9, 7 }
   0x4   :  { %260 = vmatprep.subr.bf16.mxu1 %v278_v0  ;;  %96 = vmatprep.subr.bf16.mxu0 %v273_v5  ;;  %v187_v12 = vld [vmem:[%s339_s2] sm:$0x7] }
   0x5   :  { %v199_v11 = vsub.s32 2, %v190_v10  ;;  %v191_v13 = vsub.s32 0, %v190_v10  ;;  %v195_v14 = vsub.s32 1, %v190_v10 }
   0x7   :  { %261 = vmatpush3.bf16.msra.mxu1 %v275_v6  ;;  %97 = vmatpush1.bf16.msra.mxu0 %v276_v7  ;;  %v200_v15 = vrot.slane %v187_v12, %v199_v11  ;;  %v192_v17 = vrot.slane %v187_v12, %v191_v13  ;;  %v196_v18 = vrot.slane %v187_v12, %v195_v14 }
   0xa   :  { %263 = vmatmul.mubr.msk.bf16.vlgmr.msra.gmra.mxu1 %vm78_vm1, %v277_v8  ;;  %245 = vmatmul.mubr.msk.bf16.vlgmr.msra.gmra.mxu0 %vm78_vm1, %v277_v8 }
  0xca   :  { %v159_v16 = vpop.f32.mrf.mxu1  ;;  %v116_v20 = vpop.f32.mrf.mxu0 }
  0xcb   :  { %v206_v19 = vadd.f32 %v200_v15, %v159_v16  ;;  %v204_v24 = vadd.f32 %v192_v17, %v116_v20 }
  0xcc   :  { %v264_v21 = vpop.f32.mrf.mxu1  ;;  %v118_v23 = vpop.f32.mrf.mxu0 }
  0xcd   :  { %v252_v22 = vpack.c.bf16 %v206_v19, %v206_v19  ;;  %v205_v25 = vadd.f32 %v196_v18, %v118_v23 }
  0xce   :  { %v162_v26 = vpop.f32.mrf.mxu1  ;;  %v120_v28 = vpop.f32.mrf.mxu0 }
  0xcf   :  { %231 = vst [vmem:[%s340_s3 + $0x8] sm:$0xf] %v252_v22  ;;  %v209_v27 = vadd.f32 %v200_v15, %v162_v26  ;;  %v251_v29 = vpack.c.bf16 %v205_v25, %v204_v24  ;;  %v207_v33 = vadd.f32 %v192_v17, %v120_v28 }
  0xd0   :  { %v265_v30 = vpop.f32.mrf.mxu1  ;;  %v122_v32 = vpop.f32.mrf.mxu0 }
  0xd1   :  { %v254_v31 = vpack.c.bf16 %v209_v27, %v209_v27  ;;  %230 = vst [vmem:[%s340_s3] sm:$0xff] %v251_v29  ;;  %v208_v34 = vadd.f32 %v196_v18, %v122_v32 }
  0xd3   :  { %233 = vst [vmem:[%s340_s3 + $0x14] sm:$0xf] %v254_v31  ;;  %v253_v35 = vpack.c.bf16 %v208_v34, %v207_v33 }
  0xd5   :  { %232 = vst [vmem:[%s340_s3 + $0xc] sm:$0xff] %v253_v35 }

// kernel: attr_encoder_forward.9
= control target key start
LH: loop header
LB: loop body
LE: loop exit
PB: predicated region body
PF: predicated region fallthrough
CT: control target
= control target key end

     0   :  { %11 = vsyncpa [#allocation3], 0  ;;  %s1028_s0 = inlined_call_operand.vmem [shape: f32[4,1,8], index: 0, kind: input, shape index: {}]   ;;  %s1029_s1 = inlined_call_operand.vmem [shape: bf16[4,8,64], index: 1, kind: input, shape index: {}]   ;;  %s1030_s2 = inlined_call_operand.vmem [shape: bf16[4,8,64], index: 2, kind: input, shape index: {}]   ;;  %s1031_s3 = inlined_call_operand.vmem [shape: bf16[4,8,64], index: 3, kind: input, shape index: {}]   ;;  %s1032_s4 = inlined_call_operand.vmem [shape: bf16[4,8,64], index: 4, kind: output, shape index: {0}]   ;;  %s1033_s5 = inlined_call_operand.hbm [shape: f32[4,8,8], index: 5, kind: output, shape index: {1}]  }
   0x1   :  { %13 = vsyncpa [#allocation3 + $0x1], 0  ;;  %s897_s18 = smov 0   ;;  %s899_s19 = smov 0  }
   0x2   :  { %s901_s20 = smov 0   ;;  %s903_s21 = smov 0  }
   0x3 LB: > { %s918_s22 = sadd.s32 4294967295, %s859_s21   ;;  %s691_s23 = sadd.s32 4294967294, %s859_s21   ;;  %s859_s21 = sphi %s903_s21, %s1039_s21   ;;  %s855_s20 = sphi %s901_s20, %s1038_s20   ;;  %s851_s19 = sphi %s899_s19, %s1037_s19   ;;  %s847_s18 = sphi %s897_s18, %s1036_s18  }
   0x4   : > { %s922_s24 = sadd.s32 1, %s859_s21   ;;  %s156_s25 = sadd.s32 1, %s855_s20 }
   0x5   : > { %s153_s26 = ssub.s32 %s859_s21, %s922_s24  ;;  %p166_p0 = scmp.ne.s32.totalorder %s855_s20, %s851_s19 }
   0x6   : > { %p154_p1 = scmp.eq.s32.totalorder %s153_s26, 0  ;;  %p167_p2 = scmp.eq.s32.totalorder %s918_s22, 1 }
   0x7   : > { %p172_p3 = scmp.ne.s32.totalorder %s851_s19, %s847_s18  ;;  %p173_p4 = scmp.eq.s32.totalorder %s691_s23, 1 }
   0x8   : > { %s933_s27 = scalar_select %p154_p1, %s855_s20, %s156_s25  }
   0x9   : > { %p935_p5 = por %p167_p2, %p166_p0  ;;  %p939_p6 = por %p173_p4, %p172_p3 }
   0xa   : > { %p694_p7 = scmp.ge.s32.totalorder %s859_s21, 1  ;;  %p226_p8 = scmp.lt.s32.totalorder %s859_s21, 3 }
   0xc   : > { %p227_p9 = pnand %p694_p7, %p226_p8 }
   0xd   : > { %s696_s30 = sshll.u32 (!%p227_p9), %s918_s22, 1  ;;  %s270_s25 = sand.u32 (!%p227_p9), 1, %s851_s19  }
   0xe   : > { %230 = sbr.rel (%p227_p9) target bundleno = 744 (0x2e8), region = 36  ;;  %p274_p10 = scmp.lt.s32.totalorder (!%p227_p9), %s696_s30, 3 }
   0xf   : > { %s695_s26 = sshll.u32 (!%p227_p9), %s270_s25, 4  ;;  %s714_s7 = sshll.u32 (!%p227_p9), %s918_s22, 8 }
  0x10   : > { %s980_s11 = scalar_lea.hbm (!%p227_p9), %s1033_s5, %s714_s7  ;;  %s864_s14 = smov (!%p227_p9), [#allocation2]  }
  0x11   : > { %s803_s22 = sshll.u32 (!%p227_p9), %s864_s14, 4  ;;  %s804_s22 = int_to_ptr.vmem [resolvable:$false] %s803_s22 }
  0x13   : > { %v861_v0 = vmov 0.0   ;;  %vm862_vm0 = vmmov 0   ;;  %s1041_s30 = smov (!%p274_p10, %s696_s30), 3  ;;  %vm314_vm1 = vcmask 523264   ;;  %v411_v7 = vlaneseq }
  0x14   : > { %723 = vmatprep.subr.bf16.mxu0 %v861_v0  ;;  %729 = vmatprep.subr.bf16.mxu1 %v861_v0  ;;  %s948_s6 = sshll.u32 %s1041_s30, 2  ;;  %s276_s15 = scalar_lea.vmem %s1028_s0, %s1041_s30  ;;  %v863_v12 = vmov 0   ;;  %vm423_vm6 = vcmask 64512   ;;  %vm451_vm7 = vcmask 1043456  }
  0x15   : > { %725 = vmatprep.mubr.msk.bf16.mxu0 %vm862_vm0, %v861_v0  ;;  %731 = vmatprep.mubr.msk.bf16.mxu1 %vm862_vm0, %v861_v0  ;;  %s288_s9 = scalar_lea.vmem %s1030_s2, %s948_s6  ;;  %s282_s12 = scalar_lea.vmem %s1029_s1, %s948_s6  ;;  %v310_v8 = vld [vmem:[%s276_s15] sm:$0x1]  ;;  %v311_v9 = vld [vmem:[%s276_s15 + $0x1] sm:$0x1]  ;;  %v412_v10 = vshrl.u32 %v411_v7, 7 }
  0x16   : > { %v306_v1 = vld [vmem:[%s288_s9] sm:$0xf]  ;;  %v307_v2 = vld [vmem:[%s288_s9 + $0x4] sm:$0xf]  ;;  %vm312_vm2 = vcmp.gt.f32.partialorder %v310_v8, 0.0  ;;  %vm313_vm3 = vcmp.gt.f32.partialorder %v311_v9, 0.0  ;;  %s294_s23 = scalar_lea.vmem %s1031_s3, %s948_s6 }
  0x17   : > { %v319_v3 = vsel %vm314_vm1, %v306_v1, 0  ;;  %v365_v4 = vsel %vm314_vm1, %v307_v2, 0  ;;  %v304_v5 = vld [vmem:[%s282_s12] sm:$0xf]  ;;  %v305_v6 = vld [vmem:[%s282_s12 + $0x4] sm:$0xf] }
  0x18   : > { %724 = vmatpush3.bf16.xpose.msra.mxu0 %v319_v3  ;;  %730 = vmatpush3.bf16.xpose.msra.mxu1 %v365_v4  ;;  %v413_v11 = vsub.s32 0, %v412_v10  ;;  %v409_v13 = vsel %vm312_vm2, 1, %v863_v12  ;;  %v410_v14 = vsel %vm313_vm3, 1, %v863_v12  ;;  %v308_v41 = vld [vmem:[%s294_s23] sm:$0xf]  ;;  %s272_s30 = scalar_lea.vmem [#allocation2], %s695_s26 }
  0x19   : > { %735 = vmatprep.subr.bf16.mxu0 %v861_v0  ;;  %741 = vmatprep.subr.bf16.mxu1 %v861_v0  ;;  %v453_v42 = vsel %vm451_vm7, %v308_v41, 0  ;;  %v309_v43 = vld [vmem:[%s294_s23 + $0x4] sm:$0xf]  ;;  %s571_s8 = sshll.u32 %s272_s30, 4  ;;  %s984_s12 = scalar_lea.sflag [#allocation3], %s270_s25  ;;  %s982_s8 = int_to_ptr.vmem [resolvable:$true] %s571_s8 }
  0x1a   : > { %v414_v15 = vrot.slane %v409_v13, %v413_v11  ;;  %v418_v16 = vrot.slane %v410_v14, %v413_v11  ;;  %v499_v44 = vsel %vm451_vm7, %v309_v43, 0  ;;  %s799_s13 = scalar_lea.vmem %s982_s8, 256  ;;  %s805_s15 = scalar_lea.vmem %s804_s22, 512 }
  0x1b   : > { %p800_p11 = scmp.ne.s32.totalorder %s982_s8, %s799_s13  ;;  %p806_p0 = scmp.lt.s32.totalorder %s982_s8, %s804_s22 }
  0x1c   : > { %vm419_vm4 = vcmp.eq.s32.totalorder %v414_v15, 1  ;;  %vm420_vm5 = vcmp.eq.s32.totalorder %v418_v16, 1  ;;  %p807_p1 = scmp.lt.s32.totalorder %s805_s15, %s799_s13 }
  0x1d   : > { %p801_p12 = pnand %p800_p11, %p935_p5 }
  0x1e   : > { %p808_p2 = por %p807_p1, %p806_p0 }
  0x1f   : > { %726 = vmatmul.mubr.msk.bf16.vlgmr.msra.gmra.mxu0 %vm314_vm1, %v304_v5  ;;  %732 = vmatmul.mubr.msk.bf16.vlgmr.msra.gmra.mxu1 %vm314_vm1, %v305_v6  ;;  %p802_p13 = pneg %p801_p12 }
  0x20   : > { %737 = vmatprep.mubr.msk.bf16.mxu0 %vm862_vm0, %v861_v0  ;;  %743 = vmatprep.mubr.msk.bf16.mxu1 %vm862_vm0, %v861_v0 }
  0x21   : > { %736 = vmatpush3.bf16.msra.mxu0 %v453_v42  ;;  %742 = vmatpush3.bf16.msra.mxu1 %v499_v44  ;;  %p809_p3 = pnand %p808_p2, %p802_p13 }
  0xdf   : > { %v355_v17 = vpop.f32.mrf.mxu0  ;;  %v401_v18 = vpop.f32.mrf.mxu1 }
  0xe0   : > { %v407_v19 = vmul.f32 0.125, %v355_v17  ;;  %v408_v20 = vmul.f32 0.125, %v401_v18 }
  0xe1   : > { %v727_v21 = vpop.f32.mrf.mxu0  ;;  %v733_v22 = vpop.f32.mrf.mxu1 }
  0xe2   : > { %v421_v23 = vsel %vm419_vm4, -1e+09, %v407_v19  ;;  %v422_v24 = vsel %vm420_vm5, -1e+09, %v408_v20 }
  0xe3   : > { %v358_v25 = vpop.f32.mrf.mxu0  ;;  %v404_v26 = vpop.f32.mrf.mxu1  ;;  %v424_v27 = vsel %vm423_vm6, %v421_v23, -inf  ;;  %v427_v30 = vsel %vm423_vm6, %v422_v24, -inf }
  0xe4   : > { %425 = vmax.xlane.f32.xlu0 %v424_v27 }
  0xe5   : > { %v728_v28 = vpop.f32.mrf.mxu0  ;;  %v734_v29 = vpop.f32.mrf.mxu1 }
  0xe8   : > { %428 = vmax.xlane.f32.xlu0 %v427_v30 }
 0x16d   : > { %v426_v31 = vpop.xlane.xlu0 %425 }
 0x16e   : > { %v430_v32 = vsub.f32 %v421_v23, %v426_v31 }
 0x170   : > { %v432_v33 = vmul.f32 1.442695, %v430_v32 }
 0x171   : > { %v429_v34 = vpop.xlane.xlu0 %428 }
 0x172   : > { %791 = vpow2.f32 %v432_v33  ;;  %v431_v35 = vsub.f32 %v422_v24, %v429_v34 }
 0x174   : > { %v434_v36 = vmul.f32 1.442695, %v431_v35 }
 0x176   : > { %793 = vpow2.f32 %v434_v36 }
 0x17f   : > { %v792_v37 = vpop.eup %791 }
 0x180   : > { %v436_v38 = vsel %vm423_vm6, %v792_v37, 0.0 }
 0x181   : > { %437 = vadd.xlane.f32.xlu1 %v436_v38 }
 0x183   : > { %v794_v39 = vpop.eup %793 }
 0x184   : > { %v439_v40 = vsel %vm423_vm6, %v794_v39, 0.0 }
 0x185   : > { %440 = vadd.xlane.f32.xlu1 %v439_v40 }
 0x20a   : > { %v438_v45 = vpop.xlane.xlu1 %437 }
 0x20b   : > { %795 = vrcp.f32 %v438_v45 }
 0x20e   : > { %v441_v46 = vpop.xlane.xlu1 %440 }
 0x20f   : > { %797 = vrcp.f32 %v441_v46 }
 0x218   : > { %v796_v47 = vpop.eup %795 }
 0x219   : > { %v443_v48 = vmul.f32 %v796_v47, %v792_v37 }
 0x21b   : > { %v446_v49 = vpack.c.bf16 %v443_v48, %v443_v48  ;;  %546 = vst.msk [vmem:[%s272_s30] sm:$0xff] %vm423_vm6, %v443_v48 }
 0x21c   : > { %v798_v50 = vpop.eup %797 }
 0x21d   : > { %v445_v51 = vmul.f32 %v798_v50, %v794_v39  ;;  %738 = vmatmul.mubr.msk.bf16.vlgmr.msra.gmra.mxu0 %vm423_vm6, %v446_v49 }
 0x21f   : > { %v447_v52 = vpack.c.bf16 %v445_v51, %v445_v51  ;;  %547 = vst.msk [vmem:[%s272_s30 + $0x8] sm:$0xff] %vm423_vm6, %v445_v51 }
 0x221   : > { %744 = vmatmul.mubr.msk.bf16.vlgmr.msra.gmra.mxu1 %vm423_vm6, %v447_v52 }
 0x222   : > { %812 = shalt.err (!%p809_p3)
}
 0x223   : > { %s813_s16 = scalar_lea.hbm %s980_s11, 256  ;;  %s817_s25 = scalar_lea.hbm %s1033_s5, 512 }
 0x224   : > { %p814_p4 = scmp.ne.s32.totalorder %s980_s11, %s813_s16  ;;  %p818_p9 = scmp.lt.s32.totalorder %s980_s11, %s1033_s5 }
 0x225   : > { %p819_p10 = scmp.lt.s32.totalorder %s817_s25, %s813_s16 }
 0x226   : > { %p815_p7 = pnand %p814_p4, %p935_p5 }
 0x227   : > { %p820_p11 = por %p819_p10, %p818_p9 }
 0x228   : > { %p816_p8 = pneg %p815_p7 }
 0x22a   : > { %p821_p12 = pnand %p820_p11, %p816_p8 }
 0x22c   : > { %824 = shalt.err (!%p821_p12)
}
 0x22d   : > { %s865_s7 = smov 128   ;;  %s866_s9 = smov 8   ;;  %vm543_vm8 = vcmask 519168  }
 0x22e   : > { %747 = dma.vmem_to_hbm [thread:$0]  (%p935_p5), %s982_s8, 256, %s980_s11, %s984_s12, %s865_s7, %s865_s7, %s866_s9  }
 0x22f   : > { %s300_s14 = scalar_lea.vmem %s1032_s4, %s948_s6 }
 0x2dd   : > { %v489_v53 = vpop.f32.mrf.mxu0 }
 0x2de   : > { %v541_v54 = vpack.c.bf16 %v489_v53, %v489_v53 }
 0x2df   : > { %v739_v55 = vpop.f32.mrf.mxu0 }
 0x2e0   : > { %544 = vst.msk [vmem:[%s300_s14] sm:$0xf] %vm543_vm8, %v541_v54 }
 0x2e1   : > { %v492_v56 = vpop.f32.mrf.mxu0  ;;  %v535_v57 = vpop.f32.mrf.mxu1 }
 0x2e2   : > { %v542_v58 = vpack.c.bf16 %v535_v57, %v535_v57 }
 0x2e3   : > { %v740_v59 = vpop.f32.mrf.mxu0  ;;  %v745_v60 = vpop.f32.mrf.mxu1 }
 0x2e4   : > { %545 = vst.msk [vmem:[%s300_s14 + $0x4] sm:$0xf] %vm543_vm8, %v542_v58 }
 0x2e5   : > { %v538_v61 = vpop.f32.mrf.mxu1 }
 0x2e7   : > { %v746_v62 = vpop.f32.mrf.mxu1 }
 0x2e8 PF: > { %p753_p5 = scmp.ge.s32.totalorder %s859_s21, 2  ;;  %s594_s28 = sand.u32 1, %s847_s18  }
 0x2e9   : > { %s595_s6 = scalar_lea.sflag [#allocation3], %s594_s28 }
 0x2ea   : > { %p750_p13 = pnand %p753_p5, %p939_p6 }
 0x2ec   : > { %p751_p0 = pneg %p750_p13 }
 0x2ee   : > { %842 = dma.done.wait (%p751_p0), %s595_s6, 256  }
 0x2ef   : > { %844 = vsyncadd (%p751_p0), %s595_s6, 4294967040  ;;  %p16_p1 = scmp.ge.s32.totalorder %s922_s24, 4   ;;  %s1036_s18 = smov %s851_s19 }
 0x2f0   : > { %s1037_s19 = smov %s855_s20  ;;  %s1038_s20 = smov %s933_s27 }
 0x2f1   : > { %s1039_s21 = smov %s922_s24  ;;  %18 = sbr.rel (!%p16_p1) target bundleno = 3 (0x3), region = 92 }
 0x2f6   :  { %600 = vsyncpa [#allocation3], 1 }
 0x2f7   :  { %602 = vsyncpa [#allocation3 + $0x1], 1 }

// kernel: attr_encoder_forward.11
= control target key start
LH: loop header
LB: loop body
LE: loop exit
PB: predicated region body
PF: predicated region fallthrough
CT: control target
= control target key end

     0   :  { %s1909_s18 = smov 0   ;;  %s1911_s19 = smov 0   ;;  %s2155_s0 = inlined_call_operand.vmem [shape: f32[16,32], index: 0, kind: input, shape index: {}]   ;;  %s2156_s1 = inlined_call_operand.vmem [shape: bf16[32,2048], index: 1, kind: input, shape index: {}]   ;;  %s2157_s2 = inlined_call_operand.vmem [shape: f32[1,2048], index: 2, kind: input, shape index: {}]   ;;  %s2158_s3 = inlined_call_operand.vmem [shape: bf16[2048,32], index: 3, kind: input, shape index: {}]   ;;  %s2159_s4 = inlined_call_operand.vmem [shape: f32[1,32], index: 4, kind: input, shape index: {}]   ;;  %s2160_s5 = inlined_call_operand.vmem [shape: f32[16,32], index: 5, kind: output, shape index: {}]  }
   0x1   :  { %s1913_s20 = smov 0   ;;  %s1915_s21 = smov 0  }
   0x2   :  { %s1917_s22 = smov 0  }
   0x3 LB: > { %s24_s23 = sadd.s32 1, %s1871_s21  ;;  %p67_p1 = scmp.ne.s32.totalorder %s1863_s19, %s1859_s18  ;;  %s1875_s22 = sphi %s1917_s22, %s15_s22   ;;  %s1871_s21 = sphi %s1915_s21, %s2164_s21   ;;  %s1867_s20 = sphi %s1913_s20, %s2163_s20   ;;  %s1863_s19 = sphi %s1911_s19, %s2162_s19   ;;  %s1859_s18 = sphi %s1909_s18, %s2161_s18  }
   0x4   : > { %p25_p0 = scmp.ge.s32.totalorder %s24_s23, 2  ;;  %p68_p2 = scmp.eq.s32.totalorder %s1875_s22, 0 }
   0x5   : > { %s60_s25 = sadd.s32 1, %s1863_s19  ;;  %p1538_p5 = scmp.ge.s32.totalorder %s1875_s22, 2 }
   0x6   : > { %s2166_s23 = smov (%p25_p0, %s24_s23), 0  ;;  %p69_p3 = por %p68_p2, %p67_p1 }
   0x7   : > { %s57_s24 = ssub.s32 %s1871_s21, %s2166_s23  ;;  %204 = sbr.rel (%p1538_p5) target bundleno = 24 (0x18), region = 24 }
   0x8   : > { %p58_p4 = scmp.eq.s32.totalorder %s57_s24, 0 }
   0xa   : > { %s1944_s26 = scalar_select %p58_p4, %s1863_s19, %s60_s25  }
   0xc   : > { %207 = sbr.rel (!%p69_p3) target bundleno = 24 (0x18), region = 28  ;;  %s209_s27 = sand.u32 (%p69_p3), 1, %s1863_s19  }
   0xd   : > { %s1638_s28 = sshll.u32 (%p69_p3), %s1871_s21, 5  ;;  %s1539_s29 = sshll.u32 (%p69_p3), %s209_s27, 7 }
   0xe   : > { %s1952_s7 = scalar_lea.vmem (%p69_p3), %s2156_s1, %s1638_s28  ;;  %s211_s8 = scalar_lea.vmem (%p69_p3), [#allocation3], %s1539_s29 }
   0xf   : > { %v227_v0 = vld [vmem:[%s1952_s7] sm:$0xff] (%p69_p3)  ;;  %v229_v1 = vld [vmem:[%s1952_s7 + $0x8] sm:$0xff] (%p69_p3)  ;;  %v231_v2 = vld [vmem:[%s1952_s7 + $0x10] sm:$0xff] (%p69_p3) }
  0x10   : > { %228 = vst [vmem:[%s211_s8] sm:$0xff] (%p69_p3), %v227_v0  ;;  %230 = vst [vmem:[%s211_s8 + $0x8] sm:$0xff] (%p69_p3), %v229_v1  ;;  %v233_v3 = vld [vmem:[%s1952_s7 + $0x18] sm:$0xff] (%p69_p3)  ;;  %v235_v4 = vld [vmem:[%s1952_s7 + $0x40] sm:$0xff] (%p69_p3) }
  0x11   : > { %232 = vst [vmem:[%s211_s8 + $0x10] sm:$0xff] %v231_v2  ;;  %v237_v5 = vld [vmem:[%s1952_s7 + $0x48] sm:$0xff]  ;;  %234 = vst [vmem:[%s211_s8 + $0x18] sm:$0xff] %v233_v3  ;;  %v239_v6 = vld [vmem:[%s1952_s7 + $0x50] sm:$0xff] }
  0x12   : > { %236 = vst [vmem:[%s211_s8 + $0x20] sm:$0xff] %v235_v4  ;;  %238 = vst [vmem:[%s211_s8 + $0x28] sm:$0xff] %v237_v5  ;;  %v241_v7 = vld [vmem:[%s1952_s7 + $0x58] sm:$0xff]  ;;  %v243_v8 = vld [vmem:[%s1952_s7 + $0x80] sm:$0xff] }
  0x13   : > { %240 = vst [vmem:[%s211_s8 + $0x30] sm:$0xff] %v239_v6  ;;  %242 = vst [vmem:[%s211_s8 + $0x38] sm:$0xff] %v241_v7  ;;  %v245_v9 = vld [vmem:[%s1952_s7 + $0x88] sm:$0xff]  ;;  %v247_v10 = vld [vmem:[%s1952_s7 + $0x90] sm:$0xff] }
  0x14   : > { %244 = vst [vmem:[%s211_s8 + $0x40] sm:$0xff] %v243_v8  ;;  %v249_v11 = vld [vmem:[%s1952_s7 + $0x98] sm:$0xff]  ;;  %246 = vst [vmem:[%s211_s8 + $0x48] sm:$0xff] %v245_v9  ;;  %v251_v12 = vld [vmem:[%s1952_s7 + $0xc0] sm:$0xff] }
  0x15   : > { %248 = vst [vmem:[%s211_s8 + $0x50] sm:$0xff] %v247_v10  ;;  %250 = vst [vmem:[%s211_s8 + $0x58] sm:$0xff] %v249_v11  ;;  %v253_v13 = vld [vmem:[%s1952_s7 + $0xc8] sm:$0xff]  ;;  %v255_v14 = vld [vmem:[%s1952_s7 + $0xd0] sm:$0xff] }
  0x16   : > { %252 = vst [vmem:[%s211_s8 + $0x60] sm:$0xff] %v251_v12  ;;  %254 = vst [vmem:[%s211_s8 + $0x68] sm:$0xff] %v253_v13  ;;  %v257_v15 = vld [vmem:[%s1952_s7 + $0xd8] sm:$0xff] }
  0x17   : > { %256 = vst [vmem:[%s211_s8 + $0x70] sm:$0xff] %v255_v14  ;;  %258 = vst [vmem:[%s211_s8 + $0x78] sm:$0xff] %v257_v15 }
  0x18 PF: > { %p1542_p6 = scmp.ge.s32.totalorder %s1875_s22, 1  ;;  %p280_p7 = scmp.lt.s32.totalorder %s1875_s22, 3 }
  0x1a   : > { %p281_p8 = pnand %p1542_p6, %p280_p7 }
  0x1b   : > { %s287_s9 = sand.u32 (!%p281_p8), 1, %s1859_s18   ;;  %s1544_s10 = sshll.u32 (!%p281_p8), %s1867_s20, 3 }
  0x1c   : > { %284 = sbr.rel (%p281_p8) target bundleno = 816 (0x330), region = 59  ;;  %s1543_s11 = sshll.u32 (!%p281_p8), %s287_s9, 7 }
  0x1d   : > { %p336_p9 = scmp.lt.s32.totalorder (!%p281_p8), %s1544_s10, 15  ;;  %s1545_s12 = sshll.u32 (!%p281_p8), %s1867_s20, 7 }
  0x1e   : > { %p341_p10 = scmp.lt.s32.totalorder (!%p281_p8), %s1545_s12, 255  ;;  %s1986_s18 = scalar_lea.vmem (!%p281_p8), [#allocation3], %s1543_s11 }
  0x1f   : > { %p1547_p11 = scmp.ne.s32.totalorder (!%p281_p8), %s1867_s20, 0 }
  0x21   : > { %s2168_s10 = smov (!%p336_p9, %s1544_s10), 15  ;;  %s2170_s12 = smov (!%p341_p10, %s1545_s12), 255 }
  0x22   : > { %s338_s15 = scalar_lea.vmem %s2157_s2, %s2168_s10  ;;  %s1546_s16 = sshll.u32 %s2170_s12, 2 }
  0x23   : > { %s1984_s25 = scalar_lea.vmem %s2158_s3, %s1546_s16  ;;  %356 = sbr.rel (%p1547_p11) target bundleno = 42 (0x2a), region = 67 }
  0x28   : > { %vm357_vm0 = vcmask 261120   ;;  %v1877_v16 = vmov 0.0  }
  0x29   : > { %358 = vst.msk [vmem:[#allocation2] sm:$0xff] %vm357_vm0, %v1877_v16  ;;  %359 = vst.msk [vmem:[#allocation2 + $0x8] sm:$0xff] %vm357_vm0, %v1877_v16 }
  0x2a PF: > { %v371_v17 = vld [vmem:[%s1986_s18 + $0x40] sm:$0xff]  ;;  %v372_v19 = vld [vmem:[%s1986_s18 + $0x48] sm:$0xff]  ;;  %v1878_v25 = vmov 0   ;;  %v360_v32 = vld [vmem:[%s2155_s0] sm:$0xff]  ;;  %vm501_vm1 = vcmask 261120   ;;  %p1632_p12 = scmp.ne.s32.totalorder %s1867_s20, 1 }
  0x2b   : > { %v375_v18 = vld [vmem:[%s1986_s18 + $0x60] sm:$0xff]  ;;  %v376_v21 = vld [vmem:[%s1986_s18 + $0x68] sm:$0xff]  ;;  %537 = vmatprep.mubr.bf16.mxu0 %v1878_v25  ;;  %580 = vmatprep.mubr.bf16.mxu1 %v1878_v25  ;;  %v373_v33 = vld [vmem:[%s1986_s18 + $0x50] sm:$0xff] }
  0x2c   : > { %v1557_v20 = vcombine.high %v371_v17, %v375_v18  ;;  %v1556_v22 = vcombine.low %v371_v17, %v375_v18  ;;  %v363_v23 = vld [vmem:[%s1986_s18] sm:$0xff]  ;;  %v1559_v26 = vcombine.high %v372_v19, %v376_v21  ;;  %v1558_v27 = vcombine.low %v372_v19, %v376_v21  ;;  %v364_v29 = vld [vmem:[%s1986_s18 + $0x8] sm:$0xff]  ;;  %v377_v34 = vld [vmem:[%s1986_s18 + $0x70] sm:$0xff] }
  0x2d   : > { %v367_v24 = vld [vmem:[%s1986_s18 + $0x20] sm:$0xff]  ;;  %v368_v30 = vld [vmem:[%s1986_s18 + $0x28] sm:$0xff]  ;;  %v361_v36 = vld [vmem:[%s2155_s0 + $0x8] sm:$0xff]  ;;  %v1561_v40 = vcombine.high %v373_v33, %v377_v34  ;;  %v1560_v47 = vcombine.low %v373_v33, %v377_v34 }
  0x2e   : > { %v1549_v28 = vcombine.high %v363_v23, %v367_v24  ;;  %517 = vmatprep.subr.bf16.mxu0 %v1557_v20  ;;  %v1551_v31 = vcombine.high %v364_v29, %v368_v30  ;;  %560 = vmatprep.subr.bf16.mxu1 %v1559_v26  ;;  %v1548_v35 = vcombine.low %v363_v23, %v367_v24  ;;  %v374_v37 = vld [vmem:[%s1986_s18 + $0x58] sm:$0xff]  ;;  %v365_v41 = vld [vmem:[%s1986_s18 + $0x10] sm:$0xff]  ;;  %v1769_v52 = vld [vmem:[%s1984_s25 + $0x78] sm:$0xff]   ;;  %v381_v23 = vlaneseq }
  0x2f   : > { %518 = vmatpush1.bf16.msra.mxu0 %v1556_v22  ;;  %v378_v38 = vld [vmem:[%s1986_s18 + $0x78] sm:$0xff]  ;;  %561 = vmatpush1.bf16.msra.mxu1 %v1558_v27  ;;  %v1550_v39 = vcombine.low %v364_v29, %v368_v30  ;;  %v369_v42 = vld [vmem:[%s1986_s18 + $0x30] sm:$0xff]  ;;  %v362_v45 = vpack.c.bf16 %v361_v36, %v360_v32  ;;  %v1770_v54 = vld [vmem:[%s1984_s25 + $0xf8] sm:$0xff]  }
  0x30   : > { %519 = vmatprep.subr.bf16.mxu0 %v1549_v28  ;;  %562 = vmatprep.subr.bf16.mxu1 %v1551_v31  ;;  %v1563_v43 = vcombine.high %v374_v37, %v378_v38  ;;  %v366_v44 = vld [vmem:[%s1986_s18 + $0x18] sm:$0xff]  ;;  %v1562_v48 = vcombine.low %v374_v37, %v378_v38  ;;  %v1553_v49 = vcombine.high %v365_v41, %v369_v42  ;;  %v1771_v55 = vld [vmem:[%s1984_s25 + $0x38] sm:$0xff]   ;;  %v1773_v57 = vld [vmem:[%s1984_s25 + $0x70] sm:$0xff]   ;;  %v2049_v24 = vshrl.u32 %v381_v23, 7 }
  0x31   : > { %v370_v46 = vld [vmem:[%s1986_s18 + $0x38] sm:$0xff]  ;;  %v1552_v51 = vcombine.low %v365_v41, %v369_v42  ;;  %v1772_v56 = vld [vmem:[%s1984_s25 + $0xb8] sm:$0xff]   ;;  %v1774_v58 = vld [vmem:[%s1984_s25 + $0xf0] sm:$0xff]  }
  0x32   : > { %v1555_v50 = vcombine.high %v366_v44, %v370_v46  ;;  %v1554_v53 = vcombine.low %v366_v44, %v370_v46  ;;  %v1775_v59 = vld [vmem:[%s1984_s25 + $0x30] sm:$0xff]   ;;  %v1777_v61 = vld [vmem:[%s1984_s25 + $0x68] sm:$0xff]   ;;  %v1781_v1 = vld [vmem:[%s1984_s25 + $0x60] sm:$0xff]   ;;  %v383_v26 = vsub.s32 0, %v2049_v24  ;;  %v395_v27 = vsub.s32 3, %v2049_v24 }
  0x33   : > { %520 = vmatpush1.bf16.msra.mxu0 %v1548_v35  ;;  %563 = vmatpush1.bf16.msra.mxu1 %v1550_v39  ;;  %v1776_v60 = vld [vmem:[%s1984_s25 + $0xb0] sm:$0xff]   ;;  %v1778_v62 = vld [vmem:[%s1984_s25 + $0xe8] sm:$0xff]   ;;  %v1782_v2 = vld [vmem:[%s1984_s25 + $0xe0] sm:$0xff]   ;;  %v391_v29 = vsub.s32 2, %v2049_v24  ;;  %v403_v38 = vsub.s32 5, %v2049_v24 }
  0x34   : > { %603 = vmatprep.subr.bf16.mxu0 %v1561_v40  ;;  %646 = vmatprep.subr.bf16.mxu1 %v1563_v43  ;;  %v1779_v63 = vld [vmem:[%s1984_s25 + $0x28] sm:$0xff]   ;;  %v1783_v3 = vld [vmem:[%s1984_s25 + $0x20] sm:$0xff]   ;;  %v1785_v5 = vld [vmem:[%s1984_s25 + $0x58] sm:$0xff]   ;;  %v411_v40 = vsub.s32 7, %v2049_v24 }
  0x35   : > { %v1780_v0 = vld [vmem:[%s1984_s25 + $0xa8] sm:$0xff]   ;;  %v1784_v4 = vld [vmem:[%s1984_s25 + $0xa0] sm:$0xff]   ;;  %v1786_v6 = vld [vmem:[%s1984_s25 + $0xd8] sm:$0xff]  }
  0x36   : > { %1564 = vmatmul.mubr.msk.bf16.vlgmr.msra.gmra.mxu0 %vm501_vm1, %v362_v45  ;;  %1565 = vmatmul.mubr.msk.bf16.vlgmr.msra.gmra.mxu1 %vm501_vm1, %v362_v45  ;;  %v1787_v7 = vld [vmem:[%s1984_s25 + $0x18] sm:$0xff]   ;;  %v1789_v9 = vld [vmem:[%s1984_s25 + $0x50] sm:$0xff]   ;;  %v1793_v13 = vld [vmem:[%s1984_s25 + $0x48] sm:$0xff]  }
  0x37   : > { %604 = vmatpush1.bf16.msra.mxu0 %v1560_v47  ;;  %647 = vmatpush1.bf16.msra.mxu1 %v1562_v48  ;;  %v1788_v8 = vld [vmem:[%s1984_s25 + $0x98] sm:$0xff]   ;;  %v1790_v10 = vld [vmem:[%s1984_s25 + $0xd0] sm:$0xff]   ;;  %v1794_v14 = vld [vmem:[%s1984_s25 + $0xc8] sm:$0xff]  }
  0x38   : > { %605 = vmatprep.subr.bf16.mxu0 %v1553_v49  ;;  %648 = vmatprep.subr.bf16.mxu1 %v1555_v50  ;;  %v1791_v11 = vld [vmem:[%s1984_s25 + $0x10] sm:$0xff]   ;;  %v1795_v15 = vld [vmem:[%s1984_s25 + $0x8] sm:$0xff]   ;;  %v1797_v17 = vld [vmem:[%s1984_s25 + $0x40] sm:$0xff]  }
  0x39   : > { %623 = vmatprep.mubr.bf16.mxu0 %v1878_v25  ;;  %666 = vmatprep.mubr.bf16.mxu1 %v1878_v25  ;;  %v1792_v12 = vld [vmem:[%s1984_s25 + $0x90] sm:$0xff]   ;;  %v1796_v16 = vld [vmem:[%s1984_s25 + $0x88] sm:$0xff]   ;;  %v1798_v18 = vld [vmem:[%s1984_s25 + $0xc0] sm:$0xff]   ;;  %v387_v25 = vsub.s32 1, %v2049_v24 }
  0x3a   : > { %v1799_v19 = vld [vmem:[%s1984_s25] sm:$0xff]   ;;  %v1801_v21 = vld [vmem:[%s1984_s25 + $0x178] sm:$0xff]   ;;  %v1810_v23 = vld [vmem:[%s1984_s25 + $0x1e8] sm:$0xff]  }
  0x3b   : > { %606 = vmatpush1.bf16.msra.mxu0 %v1552_v51  ;;  %649 = vmatpush1.bf16.msra.mxu1 %v1554_v53  ;;  %v1800_v20 = vld [vmem:[%s1984_s25 + $0x80] sm:$0xff]   ;;  %v1802_v22 = vld [vmem:[%s1984_s25 + $0x1f8] sm:$0xff]  }
  0x3c   : > { %1639 = vmatprep.subr.bf16.mxu0 %v1769_v52  ;;  %1661 = vmatprep.subr.bf16.mxu1 %v1770_v54  ;;  %v2059_v28 = vld [vmem:[%s338_s15] sm:$0xff] }
  0x3d   : > { %v388_v32 = vrot.slane %v2059_v28, %v387_v25  ;;  %v384_v33 = vrot.slane %v2059_v28, %v383_v26  ;;  %v396_v35 = vrot.slane %v2059_v28, %v395_v27  ;;  %v392_v36 = vrot.slane %v2059_v28, %v391_v29  ;;  %v1811_v27 = vld [vmem:[%s1984_s25 + $0x128] sm:$0xff]  }
  0x3e   : > { %1566 = vmatmul.mubr.msk.bf16.vlgmr.msra.gmra.mxu0 %vm501_vm1, %v362_v45  ;;  %1567 = vmatmul.mubr.msk.bf16.vlgmr.msra.gmra.mxu1 %vm501_vm1, %v362_v45  ;;  %v404_v51 = vrot.slane %v2059_v28, %v403_v38  ;;  %v1819_v38 = vld [vmem:[%s1984_s25 + $0x118] sm:$0xff]  }
  0x3f   : > { %1640 = vmatpush3.bf16.msra.mxu0 %v1771_v55  ;;  %1662 = vmatpush3.bf16.msra.mxu1 %v1772_v56  ;;  %v412_v55 = vrot.slane %v2059_v28, %v411_v40  ;;  %v1820_v40 = vld [vmem:[%s1984_s25 + $0x198] sm:$0xff]  }
  0x40   : > { %1641 = vmatprep.subr.bf16.mxu0 %v1773_v57  ;;  %1663 = vmatprep.subr.bf16.mxu1 %v1774_v58 }
  0x43   : > { %1642 = vmatpush3.bf16.msra.mxu0 %v1775_v59  ;;  %1664 = vmatpush3.bf16.msra.mxu1 %v1776_v60 }
  0x44   : > { %1643 = vmatprep.subr.bf16.mxu0 %v1777_v61  ;;  %1665 = vmatprep.subr.bf16.mxu1 %v1778_v62 }
  0x47   : > { %1644 = vmatpush3.bf16.msra.mxu0 %v1779_v63  ;;  %1666 = vmatpush3.bf16.msra.mxu1 %v1780_v0 }
  0x48   : > { %1645 = vmatprep.subr.bf16.mxu0 %v1781_v1  ;;  %1667 = vmatprep.subr.bf16.mxu1 %v1782_v2  ;;  %v1803_v2 = vld [vmem:[%s1984_s25 + $0x138] sm:$0xff]  }
  0x4b   : > { %1646 = vmatpush3.bf16.msra.mxu0 %v1783_v3  ;;  %1668 = vmatpush3.bf16.msra.mxu1 %v1784_v4 }
  0x4c   : > { %1647 = vmatprep.subr.bf16.mxu0 %v1785_v5  ;;  %1669 = vmatprep.subr.bf16.mxu1 %v1786_v6 }
  0x4f   : > { %1648 = vmatpush3.bf16.msra.mxu0 %v1787_v7  ;;  %1670 = vmatpush3.bf16.msra.mxu1 %v1788_v8  ;;  %v1804_v7 = vld [vmem:[%s1984_s25 + $0x1b8] sm:$0xff]   ;;  %v1805_v8 = vld [vmem:[%s1984_s25 + $0x170] sm:$0xff]  }
  0x50   : > { %1649 = vmatprep.subr.bf16.mxu0 %v1789_v9  ;;  %1671 = vmatprep.subr.bf16.mxu1 %v1790_v10 }
  0x53   : > { %1650 = vmatpush3.bf16.msra.mxu0 %v1791_v11  ;;  %1672 = vmatpush3.bf16.msra.mxu1 %v1792_v12  ;;  %v1806_v12 = vld [vmem:[%s1984_s25 + $0x1f0] sm:$0xff]  }
  0x54   : > { %1651 = vmatprep.subr.bf16.mxu0 %v1793_v13  ;;  %1673 = vmatprep.subr.bf16.mxu1 %v1794_v14 }
  0x57   : > { %1652 = vmatpush3.bf16.msra.mxu0 %v1795_v15  ;;  %1674 = vmatpush3.bf16.msra.mxu1 %v1796_v16  ;;  %v1807_v15 = vld [vmem:[%s1984_s25 + $0x130] sm:$0xff]  }
  0x58   : > { %1653 = vmatprep.subr.bf16.mxu0 %v1797_v17  ;;  %1675 = vmatprep.subr.bf16.mxu1 %v1798_v18 }
  0x5b   : > { %1654 = vmatpush3.bf16.msra.mxu0 %v1799_v19  ;;  %1676 = vmatpush3.bf16.msra.mxu1 %v1800_v20  ;;  %v1808_v19 = vld [vmem:[%s1984_s25 + $0x1b0] sm:$0xff]   ;;  %v1809_v20 = vld [vmem:[%s1984_s25 + $0x168] sm:$0xff]  }
  0x5c   : > { %1683 = vmatprep.subr.bf16.mxu0 %v1801_v21  ;;  %1705 = vmatprep.subr.bf16.mxu1 %v1802_v22 }
  0xf6   : > { %v539_v30 = vpop.f32.mrf.mxu0  ;;  %v582_v31 = vpop.f32.mrf.mxu1 }
  0xf7   : > { %v540_v44 = vadd.f32 %v539_v30, %v384_v33  ;;  %v583_v48 = vadd.f32 %v582_v31, %v392_v36  ;;  %v1812_v30 = vld [vmem:[%s1984_s25 + $0x1a8] sm:$0xff]   ;;  %v1813_v31 = vld [vmem:[%s1984_s25 + $0x160] sm:$0xff]  }
  0xf8   : > { %v541_v34 = vpop.f32.mrf.mxu0  ;;  %v584_v37 = vpop.f32.mrf.mxu1 }
  0xf9   : > { %v542_v41 = vadd.f32 %v541_v34, %v388_v32  ;;  %v585_v45 = vadd.f32 %v584_v37, %v396_v35  ;;  %v677_v60 = vmax.f32 %v540_v44, 0.0  ;;  %v679_v0 = vmax.f32 %v583_v48, 0.0  ;;  %v1815_v34 = vld [vmem:[%s1984_s25 + $0x120] sm:$0xff]   ;;  %v1818_v37 = vld [vmem:[%s1984_s25 + $0x1d8] sm:$0xff]   ;;  %v1823_v44 = vld [vmem:[%s1984_s25 + $0x110] sm:$0xff]  }
  0xfa   : > { %v543_v39 = vpop.f32.mrf.mxu0  ;;  %v586_v43 = vpop.f32.mrf.mxu1 }
  0xfb   : > { %v544_v42 = vadd.f32 %v543_v39, %v384_v33  ;;  %v587_v46 = vadd.f32 %v586_v43, %v392_v36  ;;  %v678_v56 = vmax.f32 %v542_v41, 0.0  ;;  %v680_v61 = vmax.f32 %v585_v45, 0.0  ;;  %v1814_v33 = vld [vmem:[%s1984_s25 + $0x1e0] sm:$0xff]   ;;  %v1817_v36 = vld [vmem:[%s1984_s25 + $0x158] sm:$0xff]   ;;  %v1821_v41 = vld [vmem:[%s1984_s25 + $0x150] sm:$0xff]  }
  0xfc   : > { %v545_v47 = vpop.f32.mrf.mxu0  ;;  %v588_v50 = vpop.f32.mrf.mxu1  ;;  %v399_v39 = vsub.s32 4, %v2049_v24  ;;  %v1822_v43 = vld [vmem:[%s1984_s25 + $0x1d0] sm:$0xff]  }
  0xfd   : > { %v546_v49 = vadd.f32 %v545_v47, %v388_v32  ;;  %v685_v52 = vmax.f32 %v544_v42, 0.0  ;;  %v589_v53 = vadd.f32 %v588_v50, %v396_v35  ;;  %v687_v57 = vmax.f32 %v587_v46, 0.0  ;;  %v1816_v35 = vld [vmem:[%s1984_s25 + $0x1a0] sm:$0xff]   ;;  %v1824_v46 = vld [vmem:[%s1984_s25 + $0x190] sm:$0xff]   ;;  %v1825_v47 = vld [vmem:[%s1984_s25 + $0x148] sm:$0xff]  }
  0xfe   : > { %v2069_v54 = vpop.f32.mrf.mxu0  ;;  %v2072_v59 = vpop.f32.mrf.mxu1  ;;  %v407_v42 = vsub.s32 6, %v2049_v24  ;;  %v400_v45 = vrot.slane %v2059_v28, %v399_v39  ;;  %v1827_v24 = vld [vmem:[%s1984_s25 + $0x108] sm:$0xff]  }
  0xff   : > { %v686_v58 = vmax.f32 %v546_v49, 0.0  ;;  %v688_v62 = vmax.f32 %v589_v53, 0.0  ;;  %v695_v5 = vpack.c.bf16 %v685_v52, %v677_v60  ;;  %v697_v11 = vpack.c.bf16 %v687_v57, %v679_v0  ;;  %v1826_v49 = vld [vmem:[%s1984_s25 + $0x1c8] sm:$0xff]   ;;  %v1829_v53 = vld [vmem:[%s1984_s25 + $0x140] sm:$0xff]  }
 0x100   : > { %v627_v63 = vpop.f32.mrf.mxu0  ;;  %v670_v4 = vpop.f32.mrf.mxu1  ;;  %v408_v48 = vrot.slane %v2059_v28, %v407_v42  ;;  %v626_v50 = vadd.f32 %v2069_v54, %v400_v45  ;;  %v1828_v52 = vld [vmem:[%s1984_s25 + $0x188] sm:$0xff]   ;;  %v1830_v28 = vld [vmem:[%s1984_s25 + $0x1c0] sm:$0xff]  }
 0x101   : > { %v696_v1 = vpack.c.bf16 %v686_v58, %v678_v56  ;;  %v628_v3 = vadd.f32 %v627_v63, %v404_v51  ;;  %v698_v6 = vpack.c.bf16 %v688_v62, %v680_v61  ;;  %v671_v10 = vadd.f32 %v670_v4, %v412_v55  ;;  %v1831_v57 = vld [vmem:[%s1984_s25 + $0x100] sm:$0xff]  }
 0x102   : > { %v2077_v9 = vpop.f32.mrf.mxu0  ;;  %v2080_v13 = vpop.f32.mrf.mxu1  ;;  %v681_v58 = vmax.f32 %v626_v50, 0.0  ;;  %v1832_v54 = vld [vmem:[%s1984_s25 + $0x180] sm:$0xff]  }
 0x103   : > { %1247 = vmatprep.mubr.bf16.mxu0 %v696_v1  ;;  %1288 = vmatprep.mubr.bf16.mxu1 %v698_v6  ;;  %v682_v16 = vmax.f32 %v628_v3, 0.0  ;;  %v684_v21 = vmax.f32 %v671_v10, 0.0  ;;  %v673_v56 = vadd.f32 %v2080_v13, %v408_v48 }
 0x104   : > { %1248 = vmatmul.mubr.bf16.vlgmr.msra.gmra.mxu0 %v695_v5  ;;  %v631_v14 = vpop.f32.mrf.mxu0  ;;  %1289 = vmatmul.mubr.bf16.vlgmr.msra.gmra.mxu1 %v697_v11  ;;  %v674_v18 = vpop.f32.mrf.mxu1 }
 0x105   : > { %1684 = vmatpush3.bf16.msra.mxu0 %v1803_v2  ;;  %v632_v17 = vadd.f32 %v631_v14, %v404_v51  ;;  %1706 = vmatpush3.bf16.msra.mxu1 %v1804_v7  ;;  %v675_v22 = vadd.f32 %v674_v18, %v412_v55  ;;  %v630_v51 = vadd.f32 %v2077_v9, %v400_v45  ;;  %v691_v62 = vmax.f32 %v673_v56, 0.0 }
 0x106   : > { %1685 = vmatprep.subr.bf16.mxu0 %v1805_v8  ;;  %1707 = vmatprep.subr.bf16.mxu1 %v1806_v12  ;;  %v669_v55 = vadd.f32 %v2072_v59, %v408_v48 }
 0x107   : > { %v690_v25 = vmax.f32 %v632_v17, 0.0  ;;  %v692_v26 = vmax.f32 %v675_v22, 0.0  ;;  %v689_v60 = vmax.f32 %v630_v51, 0.0  ;;  %v693_v22 = vld [vmem:[#allocation2] sm:$0xff] }
 0x108   : > { %v683_v61 = vmax.f32 %v669_v55, 0.0 }
 0x109   : > { %1686 = vmatpush3.bf16.msra.mxu0 %v1807_v15  ;;  %v700_v29 = vpack.c.bf16 %v690_v25, %v682_v16  ;;  %1708 = vmatpush3.bf16.msra.mxu1 %v1808_v19  ;;  %v702_v32 = vpack.c.bf16 %v692_v26, %v684_v21  ;;  %v699_v63 = vpack.c.bf16 %v689_v60, %v681_v58 }
 0x10a   : > { %1687 = vmatprep.subr.bf16.mxu0 %v1809_v20  ;;  %1709 = vmatprep.subr.bf16.mxu1 %v1810_v23  ;;  %v701_v0 = vpack.c.bf16 %v691_v62, %v683_v61 }
 0x10b   : > { %1329 = vmatprep.mubr.bf16.mxu0 %v700_v29  ;;  %1370 = vmatprep.mubr.bf16.mxu1 %v702_v32 }
 0x10d   : > { %1688 = vmatpush3.bf16.msra.mxu0 %v1811_v27  ;;  %1710 = vmatpush3.bf16.msra.mxu1 %v1812_v30 }
 0x10e   : > { %1689 = vmatprep.subr.bf16.mxu0 %v1813_v31  ;;  %1711 = vmatprep.subr.bf16.mxu1 %v1814_v33  ;;  %v694_v33 = vld [vmem:[#allocation2 + $0x8] sm:$0xff] }
 0x111   : > { %1690 = vmatpush3.bf16.msra.mxu0 %v1815_v34  ;;  %1712 = vmatpush3.bf16.msra.mxu1 %v1816_v35 }
 0x112   : > { %1691 = vmatprep.subr.bf16.mxu0 %v1817_v36  ;;  %1713 = vmatprep.subr.bf16.mxu1 %v1818_v37 }
 0x115   : > { %1692 = vmatpush3.bf16.msra.mxu0 %v1819_v38  ;;  %1714 = vmatpush3.bf16.msra.mxu1 %v1820_v40 }
 0x116   : > { %1693 = vmatprep.subr.bf16.mxu0 %v1821_v41  ;;  %1715 = vmatprep.subr.bf16.mxu1 %v1822_v43 }
 0x119   : > { %1694 = vmatpush3.bf16.msra.mxu0 %v1823_v44  ;;  %1716 = vmatpush3.bf16.msra.mxu1 %v1824_v46 }
 0x11a   : > { %1695 = vmatprep.subr.bf16.mxu0 %v1825_v47  ;;  %1717 = vmatprep.subr.bf16.mxu1 %v1826_v49 }
 0x11d   : > { %1696 = vmatpush3.bf16.msra.mxu0 %v1827_v24  ;;  %1718 = vmatpush3.bf16.msra.mxu1 %v1828_v52 }
 0x11e   : > { %1697 = vmatprep.subr.bf16.mxu0 %v1829_v53  ;;  %1719 = vmatprep.subr.bf16.mxu1 %v1830_v28 }
 0x121   : > { %1698 = vmatpush3.bf16.msra.mxu0 %v1831_v57  ;;  %1720 = vmatpush3.bf16.msra.mxu1 %v1832_v54 }
 0x124   : > { %1330 = vmatmul.mubr.bf16.vlgmr.msra.gmra.mxu0 %v699_v63  ;;  %1371 = vmatmul.mubr.bf16.vlgmr.msra.gmra.mxu1 %v701_v0 }
 0x1c4   : > { %v1655_v59 = vpop.f32.mrf.mxu0  ;;  %v1677_v1 = vpop.f32.mrf.mxu1 }
 0x1c6   : > { %v1656_v2 = vpop.f32.mrf.mxu0  ;;  %v1678_v3 = vpop.f32.mrf.mxu1 }
 0x1c7   : > { %v1657_v7 = vadd.f32 %v1656_v2, %v1655_v59  ;;  %v1679_v8 = vadd.f32 %v1678_v3, %v1677_v1 }
 0x1c8   : > { %v1658_v4 = vpop.f32.mrf.mxu0  ;;  %v1680_v5 = vpop.f32.mrf.mxu1 }
 0x1c9   : > { %v1291_v13 = vadd.f32 %v1679_v8, %v1657_v7 }
 0x1ca   : > { %v1659_v6 = vpop.f32.mrf.mxu0  ;;  %v1681_v9 = vpop.f32.mrf.mxu1 }
 0x1cb   : > { %v1660_v14 = vadd.f32 %v1659_v6, %v1658_v4  ;;  %v1682_v15 = vadd.f32 %v1681_v9, %v1680_v5 }
 0x1cd   : > { %v1294_v25 = vadd.f32 %v1682_v15, %v1660_v14 }
 0x1e4   : > { %v1699_v10 = vpop.f32.mrf.mxu0  ;;  %v1721_v11 = vpop.f32.mrf.mxu1 }
 0x1e6   : > { %v1700_v12 = vpop.f32.mrf.mxu0  ;;  %v1722_v17 = vpop.f32.mrf.mxu1 }
 0x1e7   : > { %v1701_v16 = vadd.f32 %v1700_v12, %v1699_v10  ;;  %v1723_v20 = vadd.f32 %v1722_v17, %v1721_v11 }
 0x1e8   : > { %v1702_v18 = vpop.f32.mrf.mxu0  ;;  %v1724_v21 = vpop.f32.mrf.mxu1 }
 0x1e9   : > { %v1332_v19 = vadd.f32 %v1701_v16, %v1291_v13 }
 0x1ea   : > { %v1703_v23 = vpop.f32.mrf.mxu0  ;;  %v1725_v29 = vpop.f32.mrf.mxu1 }
 0x1eb   : > { %v1373_v26 = vadd.f32 %v1723_v20, %v1332_v19  ;;  %v1704_v27 = vadd.f32 %v1703_v23, %v1702_v18  ;;  %v1726_v32 = vadd.f32 %v1725_v29, %v1724_v21 }
 0x1ed   : > { %v1379_v30 = vadd.f32 %v1373_v26, %v693_v22  ;;  %v1335_v31 = vadd.f32 %v1704_v27, %v1294_v25 }
 0x1ef   : > { %1381 = vst.msk [vmem:[#allocation2] sm:$0xff] %vm501_vm1, %v1379_v30  ;;  %v1376_v34 = vadd.f32 %v1726_v32, %v1335_v31  ;;  %1386 = sbr.rel (%p1632_p12) target bundleno = 816 (0x330), region = 71 }
 0x1f1   : > { %v1380_v35 = vadd.f32 %v1376_v34, %v694_v33 }
 0x1f3   : > { %1382 = vst.msk [vmem:[#allocation2 + $0x8] sm:$0xff] %vm501_vm1, %v1380_v35 }
 0x1f4   : > { %v1633_v37 = vld [vmem:[%s2159_s4] ss:$0 sm:$0xff]  ;;  %v1399_v41 = vld [vmem:[%s2155_s0 + $0x8] sm:$0xff] }
 0x1f5   : > { %v1398_v38 = vld [vmem:[%s2155_s0] sm:$0xff] }
 0x1f6   : > { %v1387_v36 = vld [vmem:[#allocation2] sm:$0xff] }
 0x1f7   : > { %v1396_v39 = vadd.f32 %v1633_v37, %v1387_v36 }
 0x1f9   : > { %v1400_v43 = vadd.f32 %v1398_v38, %v1396_v39 }
 0x1fa   : > { %v1388_v40 = vld [vmem:[#allocation2 + $0x8] sm:$0xff] }
 0x1fb   : > { %v1397_v42 = vadd.f32 %v1633_v37, %v1388_v40  ;;  %v1402_v45 = vsel %vm501_vm1, %v1400_v43, 0.0 }
 0x1fc   : > { %1403 = vadd.xlane.f32.xlu0 %v1402_v45 }
 0x1fd   : > { %v1401_v44 = vadd.f32 %v1399_v41, %v1397_v42 }
 0x1ff   : > { %v1405_v46 = vsel %vm501_vm1, %v1401_v44, 0.0 }
 0x200   : > { %1406 = vadd.xlane.f32.xlu0 %v1405_v46 }
 0x285   : > { %v1404_v47 = vpop.xlane.xlu0 %1403 }
 0x286   : > { %v1409_v48 = vmul.f32 0.03125, %v1404_v47 }
 0x288   : > { %v1411_v49 = vsub.f32 %v1400_v43, %v1409_v48 }
 0x289   : > { %v1407_v24 = vpop.xlane.xlu0 %1406 }
 0x28a   : > { %v1410_v50 = vmul.f32 0.03125, %v1407_v24  ;;  %v1413_v51 = vmul.f32 %v1411_v49, %v1411_v49 }
 0x28c   : > { %v1412_v52 = vsub.f32 %v1401_v44, %v1410_v50  ;;  %v1415_v53 = vsel %vm501_vm1, %v1413_v51, 0.0 }
 0x28d   : > { %1416 = vadd.xlane.f32.xlu1 %v1415_v53 }
 0x28e   : > { %v1414_v55 = vmul.f32 %v1412_v52, %v1412_v52 }
 0x290   : > { %v1418_v56 = vsel %vm501_vm1, %v1414_v55, 0.0 }
 0x291   : > { %1419 = vadd.xlane.f32.xlu1 %v1418_v56 }
 0x316   : > { %v1417_v28 = vpop.xlane.xlu1 %1416 }
 0x317   : > { %v1421_v57 = vmul.f32 0.03125, %v1417_v28 }
 0x319   : > { %v1423_v58 = vadd.f32 1e-05, %v1421_v57 }
 0x31a   : > { %v1420_v60 = vpop.xlane.xlu1 %1419 }
 0x31b   : > { %1833 = vrsqrt.f32 %v1423_v58  ;;  %v1422_v54 = vmul.f32 0.03125, %v1420_v60 }
 0x31d   : > { %v1424_v61 = vadd.f32 1e-05, %v1422_v54 }
 0x31f   : > { %1835 = vrsqrt.f32 %v1424_v61 }
 0x328   : > { %v1834_v62 = vpop.eup %1833 }
 0x329   : > { %v1427_v63 = vmul.f32 %v1834_v62, %v1411_v49 }
 0x32b   : > { %1429 = vst.msk [vmem:[%s2160_s5] sm:$0xff] %vm501_vm1, %v1427_v63 }
 0x32c   : > { %v1836_v0 = vpop.eup %1835 }
 0x32d   : > { %v1428_v59 = vmul.f32 %v1836_v0, %v1412_v52 }
 0x32f   : > { %1430 = vst.msk [vmem:[%s2160_s5 + $0x8] sm:$0xff] %vm501_vm1, %v1428_v59 }
 0x330 PF: > { %s15_s22 = sadd.s32 1, %s1875_s22   ;;  %s2161_s18 = smov %s1863_s19 }
 0x331   : > { %p12_p13 = scmp.ge.s32.totalorder %s15_s22, 4   ;;  %s2162_s19 = smov %s1944_s26 }
 0x332   : > { %s2163_s20 = smov %s1871_s21  ;;  %s2164_s21 = smov %s2166_s23 }
 0x333   :  { %14 = sbr.rel (!%p12_p13) target bundleno = 3 (0x3), region = 115 }

// kernel: attr_encoder_forward.15
= control target key start
LH: loop header
LB: loop body
LE: loop exit
PB: predicated region body
PF: predicated region fallthrough
CT: control target
= control target key end

     0   :  { %10 = vsyncpa [#allocation5], 0  ;;  %s1940_s18 = smov 0   ;;  %s1942_s19 = smov 0   ;;  %s2198_s0 = inlined_call_operand.vmem [shape: f32[16,32], index: 0, kind: input, shape index: {}]   ;;  %s2199_s1 = inlined_call_operand.vmem [shape: bf16[32,2048], index: 1, kind: input, shape index: {}]   ;;  %s2200_s2 = inlined_call_operand.vmem [shape: f32[1,2048], index: 2, kind: input, shape index: {}]   ;;  %s2201_s3 = inlined_call_operand.vmem [shape: bf16[2048,32], index: 3, kind: input, shape index: {}]   ;;  %s2202_s4 = inlined_call_operand.vmem [shape: f32[1,32], index: 4, kind: input, shape index: {}]   ;;  %s2203_s5 = inlined_call_operand.hbm [shape: f32[16,32], index: 5, kind: output, shape index: {}]  }
   0x1   :  { %s1944_s20 = smov 0   ;;  %s1946_s21 = smov 0  }
   0x2   :  { %s1948_s22 = smov 0  }
   0x3 LB: > { %s1526_s23 = sadd.s32 4294967295, %s1903_s22   ;;  %s25_s24 = sadd.s32 1, %s1899_s21  ;;  %s1903_s22 = sphi %s1948_s22, %s16_s22   ;;  %s1899_s21 = sphi %s1946_s21, %s2208_s21   ;;  %s1895_s20 = sphi %s1944_s20, %s2207_s20   ;;  %s1891_s19 = sphi %s1942_s19, %s2206_s19   ;;  %s1887_s18 = sphi %s1940_s18, %s2205_s18  }
   0x4   : > { %p26_p0 = scmp.ge.s32.totalorder %s25_s24, 2  ;;  %p68_p1 = scmp.ne.s32.totalorder %s1891_s19, %s1887_s18 }
   0x5   : > { %p69_p2 = scmp.eq.s32.totalorder %s1903_s22, 0  ;;  %s61_s26 = sadd.s32 1, %s1891_s19 }
   0x6   : > { %s2210_s24 = smov (%p26_p0, %s25_s24), 0  ;;  %p1529_p5 = scmp.ge.s32.totalorder %s1903_s22, 2 }
   0x7   : > { %p70_p3 = por %p69_p2, %p68_p1  ;;  %s58_s25 = ssub.s32 %s1899_s21, %s2210_s24 }
   0x8   : > { %p59_p4 = scmp.eq.s32.totalorder %s58_s25, 0  ;;  %205 = sbr.rel (%p1529_p5) target bundleno = 25 (0x19), region = 24 }
   0xa   : > { %s1976_s27 = scalar_select %p59_p4, %s1891_s19, %s61_s26  }
   0xd   : > { %208 = sbr.rel (!%p70_p3) target bundleno = 25 (0x19), region = 28  ;;  %s210_s28 = sand.u32 (%p70_p3), 1, %s1891_s19  }
   0xe   : > { %s1629_s29 = sshll.u32 (%p70_p3), %s1899_s21, 5  ;;  %s1530_s30 = sshll.u32 (%p70_p3), %s210_s28, 7 }
   0xf   : > { %s1984_s8 = scalar_lea.vmem (%p70_p3), %s2199_s1, %s1629_s29  ;;  %s212_s9 = scalar_lea.vmem (%p70_p3), [#allocation3], %s1530_s30 }
  0x10   : > { %v228_v0 = vld [vmem:[%s1984_s8] sm:$0xff] (%p70_p3)  ;;  %v230_v1 = vld [vmem:[%s1984_s8 + $0x8] sm:$0xff] (%p70_p3)  ;;  %v232_v2 = vld [vmem:[%s1984_s8 + $0x10] sm:$0xff] (%p70_p3) }
  0x11   : > { %229 = vst [vmem:[%s212_s9] sm:$0xff] (%p70_p3), %v228_v0  ;;  %231 = vst [vmem:[%s212_s9 + $0x8] sm:$0xff] (%p70_p3), %v230_v1  ;;  %v234_v3 = vld [vmem:[%s1984_s8 + $0x18] sm:$0xff] (%p70_p3)  ;;  %v236_v4 = vld [vmem:[%s1984_s8 + $0x40] sm:$0xff] (%p70_p3) }
  0x12   : > { %233 = vst [vmem:[%s212_s9 + $0x10] sm:$0xff] %v232_v2  ;;  %v238_v5 = vld [vmem:[%s1984_s8 + $0x48] sm:$0xff]  ;;  %235 = vst [vmem:[%s212_s9 + $0x18] sm:$0xff] %v234_v3  ;;  %v240_v6 = vld [vmem:[%s1984_s8 + $0x50] sm:$0xff] }
  0x13   : > { %237 = vst [vmem:[%s212_s9 + $0x20] sm:$0xff] %v236_v4  ;;  %239 = vst [vmem:[%s212_s9 + $0x28] sm:$0xff] %v238_v5  ;;  %v242_v7 = vld [vmem:[%s1984_s8 + $0x58] sm:$0xff]  ;;  %v244_v8 = vld [vmem:[%s1984_s8 + $0x80] sm:$0xff] }
  0x14   : > { %241 = vst [vmem:[%s212_s9 + $0x30] sm:$0xff] %v240_v6  ;;  %243 = vst [vmem:[%s212_s9 + $0x38] sm:$0xff] %v242_v7  ;;  %v246_v9 = vld [vmem:[%s1984_s8 + $0x88] sm:$0xff]  ;;  %v248_v10 = vld [vmem:[%s1984_s8 + $0x90] sm:$0xff] }
  0x15   : > { %245 = vst [vmem:[%s212_s9 + $0x40] sm:$0xff] %v244_v8  ;;  %v250_v11 = vld [vmem:[%s1984_s8 + $0x98] sm:$0xff]  ;;  %247 = vst [vmem:[%s212_s9 + $0x48] sm:$0xff] %v246_v9  ;;  %v252_v12 = vld [vmem:[%s1984_s8 + $0xc0] sm:$0xff] }
  0x16   : > { %249 = vst [vmem:[%s212_s9 + $0x50] sm:$0xff] %v248_v10  ;;  %251 = vst [vmem:[%s212_s9 + $0x58] sm:$0xff] %v250_v11  ;;  %v254_v13 = vld [vmem:[%s1984_s8 + $0xc8] sm:$0xff]  ;;  %v256_v14 = vld [vmem:[%s1984_s8 + $0xd0] sm:$0xff] }
  0x17   : > { %253 = vst [vmem:[%s212_s9 + $0x60] sm:$0xff] %v252_v12  ;;  %255 = vst [vmem:[%s212_s9 + $0x68] sm:$0xff] %v254_v13  ;;  %v258_v15 = vld [vmem:[%s1984_s8 + $0xd8] sm:$0xff] }
  0x18   : > { %257 = vst [vmem:[%s212_s9 + $0x70] sm:$0xff] %v256_v14  ;;  %259 = vst [vmem:[%s212_s9 + $0x78] sm:$0xff] %v258_v15 }
  0x19 PF: > { %p1533_p6 = scmp.ge.s32.totalorder %s1903_s22, 1  ;;  %p281_p7 = scmp.lt.s32.totalorder %s1903_s22, 3 }
  0x1b   : > { %p282_p8 = pnand %p1533_p6, %p281_p7 }
  0x1c   : > { %s288_s10 = sand.u32 (!%p282_p8), 1, %s1887_s18   ;;  %s1535_s11 = sshll.u32 (!%p282_p8), %s1895_s20, 3 }
  0x1d   : > { %285 = sbr.rel (%p282_p8) target bundleno = 833 (0x341), region = 59  ;;  %s1534_s12 = sshll.u32 (!%p282_p8), %s288_s10, 7 }
  0x1e   : > { %p332_p9 = scmp.lt.s32.totalorder (!%p282_p8), %s1535_s11, 15  ;;  %s1536_s13 = sshll.u32 (!%p282_p8), %s1895_s20, 7 }
  0x1f   : > { %p337_p10 = scmp.lt.s32.totalorder (!%p282_p8), %s1536_s13, 255  ;;  %s2018_s18 = scalar_lea.vmem (!%p282_p8), [#allocation3], %s1534_s12 }
  0x20   : > { %p1538_p11 = scmp.ne.s32.totalorder (!%p282_p8), %s1895_s20, 0 }
  0x22   : > { %s2212_s11 = smov (!%p332_p9, %s1535_s11), 15  ;;  %s2214_s13 = smov (!%p337_p10, %s1536_s13), 255 }
  0x23   : > { %s334_s16 = scalar_lea.vmem %s2200_s2, %s2212_s11  ;;  %s1537_s17 = sshll.u32 %s2214_s13, 2 }
  0x24   : > { %s2016_s28 = scalar_lea.vmem %s2201_s3, %s1537_s17  ;;  %347 = sbr.rel (%p1538_p11) target bundleno = 43 (0x2b), region = 67 }
  0x29   : > { %vm348_vm0 = vcmask 261120   ;;  %v1905_v16 = vmov 0.0  }
  0x2a   : > { %349 = vst.msk [vmem:[#allocation2] sm:$0xff] %vm348_vm0, %v1905_v16  ;;  %350 = vst.msk [vmem:[#allocation2 + $0x8] sm:$0xff] %vm348_vm0, %v1905_v16 }
  0x2b PF: > { %v362_v17 = vld [vmem:[%s2018_s18 + $0x40] sm:$0xff]  ;;  %v363_v19 = vld [vmem:[%s2018_s18 + $0x48] sm:$0xff]  ;;  %v1906_v25 = vmov 0   ;;  %v351_v32 = vld [vmem:[%s2198_s0] sm:$0xff]  ;;  %vm492_vm1 = vcmask 261120   ;;  %p1623_p12 = scmp.ne.s32.totalorder %s1895_s20, 1 }
  0x2c   : > { %v366_v18 = vld [vmem:[%s2018_s18 + $0x60] sm:$0xff]  ;;  %v367_v21 = vld [vmem:[%s2018_s18 + $0x68] sm:$0xff]  ;;  %528 = vmatprep.mubr.bf16.mxu0 %v1906_v25  ;;  %571 = vmatprep.mubr.bf16.mxu1 %v1906_v25  ;;  %v364_v33 = vld [vmem:[%s2018_s18 + $0x50] sm:$0xff] }
  0x2d   : > { %v1548_v20 = vcombine.high %v362_v17, %v366_v18  ;;  %v1547_v22 = vcombine.low %v362_v17, %v366_v18  ;;  %v354_v23 = vld [vmem:[%s2018_s18] sm:$0xff]  ;;  %v1550_v26 = vcombine.high %v363_v19, %v367_v21  ;;  %v1549_v27 = vcombine.low %v363_v19, %v367_v21  ;;  %v355_v29 = vld [vmem:[%s2018_s18 + $0x8] sm:$0xff]  ;;  %v368_v34 = vld [vmem:[%s2018_s18 + $0x70] sm:$0xff] }
  0x2e   : > { %v358_v24 = vld [vmem:[%s2018_s18 + $0x20] sm:$0xff]  ;;  %v359_v30 = vld [vmem:[%s2018_s18 + $0x28] sm:$0xff]  ;;  %v352_v36 = vld [vmem:[%s2198_s0 + $0x8] sm:$0xff]  ;;  %v1552_v40 = vcombine.high %v364_v33, %v368_v34  ;;  %v1551_v47 = vcombine.low %v364_v33, %v368_v34 }
  0x2f   : > { %v1540_v28 = vcombine.high %v354_v23, %v358_v24  ;;  %508 = vmatprep.subr.bf16.mxu0 %v1548_v20  ;;  %v1542_v31 = vcombine.high %v355_v29, %v359_v30  ;;  %551 = vmatprep.subr.bf16.mxu1 %v1550_v26  ;;  %v1539_v35 = vcombine.low %v354_v23, %v358_v24  ;;  %v365_v37 = vld [vmem:[%s2018_s18 + $0x58] sm:$0xff]  ;;  %v356_v41 = vld [vmem:[%s2018_s18 + $0x10] sm:$0xff]  ;;  %v1769_v52 = vld [vmem:[%s2016_s28 + $0x78] sm:$0xff]   ;;  %v372_v23 = vlaneseq }
  0x30   : > { %509 = vmatpush1.bf16.msra.mxu0 %v1547_v22  ;;  %v369_v38 = vld [vmem:[%s2018_s18 + $0x78] sm:$0xff]  ;;  %552 = vmatpush1.bf16.msra.mxu1 %v1549_v27  ;;  %v1541_v39 = vcombine.low %v355_v29, %v359_v30  ;;  %v360_v42 = vld [vmem:[%s2018_s18 + $0x30] sm:$0xff]  ;;  %v353_v45 = vpack.c.bf16 %v352_v36, %v351_v32  ;;  %v1770_v54 = vld [vmem:[%s2016_s28 + $0xf8] sm:$0xff]  }
  0x31   : > { %510 = vmatprep.subr.bf16.mxu0 %v1540_v28  ;;  %553 = vmatprep.subr.bf16.mxu1 %v1542_v31  ;;  %v1554_v43 = vcombine.high %v365_v37, %v369_v38  ;;  %v357_v44 = vld [vmem:[%s2018_s18 + $0x18] sm:$0xff]  ;;  %v1553_v48 = vcombine.low %v365_v37, %v369_v38  ;;  %v1544_v49 = vcombine.high %v356_v41, %v360_v42  ;;  %v1771_v55 = vld [vmem:[%s2016_s28 + $0x38] sm:$0xff]   ;;  %v1773_v57 = vld [vmem:[%s2016_s28 + $0x70] sm:$0xff]   ;;  %v2081_v24 = vshrl.u32 %v372_v23, 7 }
  0x32   : > { %v361_v46 = vld [vmem:[%s2018_s18 + $0x38] sm:$0xff]  ;;  %v1543_v51 = vcombine.low %v356_v41, %v360_v42  ;;  %v1772_v56 = vld [vmem:[%s2016_s28 + $0xb8] sm:$0xff]   ;;  %v1774_v58 = vld [vmem:[%s2016_s28 + $0xf0] sm:$0xff]  }
  0x33   : > { %v1546_v50 = vcombine.high %v357_v44, %v361_v46  ;;  %v1545_v53 = vcombine.low %v357_v44, %v361_v46  ;;  %v1775_v59 = vld [vmem:[%s2016_s28 + $0x30] sm:$0xff]   ;;  %v1777_v61 = vld [vmem:[%s2016_s28 + $0x68] sm:$0xff]   ;;  %v1781_v1 = vld [vmem:[%s2016_s28 + $0x60] sm:$0xff]   ;;  %v374_v26 = vsub.s32 0, %v2081_v24  ;;  %v386_v27 = vsub.s32 3, %v2081_v24 }
  0x34   : > { %511 = vmatpush1.bf16.msra.mxu0 %v1539_v35  ;;  %554 = vmatpush1.bf16.msra.mxu1 %v1541_v39  ;;  %v1776_v60 = vld [vmem:[%s2016_s28 + $0xb0] sm:$0xff]   ;;  %v1778_v62 = vld [vmem:[%s2016_s28 + $0xe8] sm:$0xff]   ;;  %v1782_v2 = vld [vmem:[%s2016_s28 + $0xe0] sm:$0xff]   ;;  %v382_v29 = vsub.s32 2, %v2081_v24  ;;  %v394_v38 = vsub.s32 5, %v2081_v24 }
  0x35   : > { %594 = vmatprep.subr.bf16.mxu0 %v1552_v40  ;;  %637 = vmatprep.subr.bf16.mxu1 %v1554_v43  ;;  %v1779_v63 = vld [vmem:[%s2016_s28 + $0x28] sm:$0xff]   ;;  %v1783_v3 = vld [vmem:[%s2016_s28 + $0x20] sm:$0xff]   ;;  %v1785_v5 = vld [vmem:[%s2016_s28 + $0x58] sm:$0xff]   ;;  %v402_v40 = vsub.s32 7, %v2081_v24 }
  0x36   : > { %v1780_v0 = vld [vmem:[%s2016_s28 + $0xa8] sm:$0xff]   ;;  %v1784_v4 = vld [vmem:[%s2016_s28 + $0xa0] sm:$0xff]   ;;  %v1786_v6 = vld [vmem:[%s2016_s28 + $0xd8] sm:$0xff]  }
  0x37   : > { %1555 = vmatmul.mubr.msk.bf16.vlgmr.msra.gmra.mxu0 %vm492_vm1, %v353_v45  ;;  %1556 = vmatmul.mubr.msk.bf16.vlgmr.msra.gmra.mxu1 %vm492_vm1, %v353_v45  ;;  %v1787_v7 = vld [vmem:[%s2016_s28 + $0x18] sm:$0xff]   ;;  %v1789_v9 = vld [vmem:[%s2016_s28 + $0x50] sm:$0xff]   ;;  %v1793_v13 = vld [vmem:[%s2016_s28 + $0x48] sm:$0xff]  }
  0x38   : > { %595 = vmatpush1.bf16.msra.mxu0 %v1551_v47  ;;  %638 = vmatpush1.bf16.msra.mxu1 %v1553_v48  ;;  %v1788_v8 = vld [vmem:[%s2016_s28 + $0x98] sm:$0xff]   ;;  %v1790_v10 = vld [vmem:[%s2016_s28 + $0xd0] sm:$0xff]   ;;  %v1794_v14 = vld [vmem:[%s2016_s28 + $0xc8] sm:$0xff]  }
  0x39   : > { %596 = vmatprep.subr.bf16.mxu0 %v1544_v49  ;;  %639 = vmatprep.subr.bf16.mxu1 %v1546_v50  ;;  %v1791_v11 = vld [vmem:[%s2016_s28 + $0x10] sm:$0xff]   ;;  %v1795_v15 = vld [vmem:[%s2016_s28 + $0x8] sm:$0xff]   ;;  %v1797_v17 = vld [vmem:[%s2016_s28 + $0x40] sm:$0xff]  }
  0x3a   : > { %614 = vmatprep.mubr.bf16.mxu0 %v1906_v25  ;;  %657 = vmatprep.mubr.bf16.mxu1 %v1906_v25  ;;  %v1792_v12 = vld [vmem:[%s2016_s28 + $0x90] sm:$0xff]   ;;  %v1796_v16 = vld [vmem:[%s2016_s28 + $0x88] sm:$0xff]   ;;  %v1798_v18 = vld [vmem:[%s2016_s28 + $0xc0] sm:$0xff]   ;;  %v378_v25 = vsub.s32 1, %v2081_v24 }
  0x3b   : > { %v1799_v19 = vld [vmem:[%s2016_s28] sm:$0xff]   ;;  %v1801_v21 = vld [vmem:[%s2016_s28 + $0x178] sm:$0xff]   ;;  %v1810_v23 = vld [vmem:[%s2016_s28 + $0x1e8] sm:$0xff]  }
  0x3c   : > { %597 = vmatpush1.bf16.msra.mxu0 %v1543_v51  ;;  %640 = vmatpush1.bf16.msra.mxu1 %v1545_v53  ;;  %v1800_v20 = vld [vmem:[%s2016_s28 + $0x80] sm:$0xff]   ;;  %v1802_v22 = vld [vmem:[%s2016_s28 + $0x1f8] sm:$0xff]  }
  0x3d   : > { %1630 = vmatprep.subr.bf16.mxu0 %v1769_v52  ;;  %1652 = vmatprep.subr.bf16.mxu1 %v1770_v54  ;;  %v2091_v28 = vld [vmem:[%s334_s16] sm:$0xff] }
  0x3e   : > { %v379_v32 = vrot.slane %v2091_v28, %v378_v25  ;;  %v375_v33 = vrot.slane %v2091_v28, %v374_v26  ;;  %v387_v35 = vrot.slane %v2091_v28, %v386_v27  ;;  %v383_v36 = vrot.slane %v2091_v28, %v382_v29  ;;  %v1811_v27 = vld [vmem:[%s2016_s28 + $0x128] sm:$0xff]  }
  0x3f   : > { %1557 = vmatmul.mubr.msk.bf16.vlgmr.msra.gmra.mxu0 %vm492_vm1, %v353_v45  ;;  %1558 = vmatmul.mubr.msk.bf16.vlgmr.msra.gmra.mxu1 %vm492_vm1, %v353_v45  ;;  %v395_v51 = vrot.slane %v2091_v28, %v394_v38  ;;  %v1819_v38 = vld [vmem:[%s2016_s28 + $0x118] sm:$0xff]  }
  0x40   : > { %1631 = vmatpush3.bf16.msra.mxu0 %v1771_v55  ;;  %1653 = vmatpush3.bf16.msra.mxu1 %v1772_v56  ;;  %v403_v55 = vrot.slane %v2091_v28, %v402_v40  ;;  %v1820_v40 = vld [vmem:[%s2016_s28 + $0x198] sm:$0xff]  }
  0x41   : > { %1632 = vmatprep.subr.bf16.mxu0 %v1773_v57  ;;  %1654 = vmatprep.subr.bf16.mxu1 %v1774_v58 }
  0x44   : > { %1633 = vmatpush3.bf16.msra.mxu0 %v1775_v59  ;;  %1655 = vmatpush3.bf16.msra.mxu1 %v1776_v60 }
  0x45   : > { %1634 = vmatprep.subr.bf16.mxu0 %v1777_v61  ;;  %1656 = vmatprep.subr.bf16.mxu1 %v1778_v62 }
  0x48   : > { %1635 = vmatpush3.bf16.msra.mxu0 %v1779_v63  ;;  %1657 = vmatpush3.bf16.msra.mxu1 %v1780_v0 }
  0x49   : > { %1636 = vmatprep.subr.bf16.mxu0 %v1781_v1  ;;  %1658 = vmatprep.subr.bf16.mxu1 %v1782_v2  ;;  %v1803_v2 = vld [vmem:[%s2016_s28 + $0x138] sm:$0xff]  }
  0x4c   : > { %1637 = vmatpush3.bf16.msra.mxu0 %v1783_v3  ;;  %1659 = vmatpush3.bf16.msra.mxu1 %v1784_v4 }
  0x4d   : > { %1638 = vmatprep.subr.bf16.mxu0 %v1785_v5  ;;  %1660 = vmatprep.subr.bf16.mxu1 %v1786_v6 }
  0x50   : > { %1639 = vmatpush3.bf16.msra.mxu0 %v1787_v7  ;;  %1661 = vmatpush3.bf16.msra.mxu1 %v1788_v8  ;;  %v1804_v7 = vld [vmem:[%s2016_s28 + $0x1b8] sm:$0xff]   ;;  %v1805_v8 = vld [vmem:[%s2016_s28 + $0x170] sm:$0xff]  }
  0x51   : > { %1640 = vmatprep.subr.bf16.mxu0 %v1789_v9  ;;  %1662 = vmatprep.subr.bf16.mxu1 %v1790_v10 }
  0x54   : > { %1641 = vmatpush3.bf16.msra.mxu0 %v1791_v11  ;;  %1663 = vmatpush3.bf16.msra.mxu1 %v1792_v12  ;;  %v1806_v12 = vld [vmem:[%s2016_s28 + $0x1f0] sm:$0xff]  }
  0x55   : > { %1642 = vmatprep.subr.bf16.mxu0 %v1793_v13  ;;  %1664 = vmatprep.subr.bf16.mxu1 %v1794_v14 }
  0x58   : > { %1643 = vmatpush3.bf16.msra.mxu0 %v1795_v15  ;;  %1665 = vmatpush3.bf16.msra.mxu1 %v1796_v16  ;;  %v1807_v15 = vld [vmem:[%s2016_s28 + $0x130] sm:$0xff]  }
  0x59   : > { %1644 = vmatprep.subr.bf16.mxu0 %v1797_v17  ;;  %1666 = vmatprep.subr.bf16.mxu1 %v1798_v18 }
  0x5c   : > { %1645 = vmatpush3.bf16.msra.mxu0 %v1799_v19  ;;  %1667 = vmatpush3.bf16.msra.mxu1 %v1800_v20  ;;  %v1808_v19 = vld [vmem:[%s2016_s28 + $0x1b0] sm:$0xff]   ;;  %v1809_v20 = vld [vmem:[%s2016_s28 + $0x168] sm:$0xff]  }
  0x5d   : > { %1674 = vmatprep.subr.bf16.mxu0 %v1801_v21  ;;  %1696 = vmatprep.subr.bf16.mxu1 %v1802_v22 }
  0xf7   : > { %v530_v30 = vpop.f32.mrf.mxu0  ;;  %v573_v31 = vpop.f32.mrf.mxu1 }
  0xf8   : > { %v531_v44 = vadd.f32 %v530_v30, %v375_v33  ;;  %v574_v48 = vadd.f32 %v573_v31, %v383_v36  ;;  %v1812_v30 = vld [vmem:[%s2016_s28 + $0x1a8] sm:$0xff]   ;;  %v1813_v31 = vld [vmem:[%s2016_s28 + $0x160] sm:$0xff]  }
  0xf9   : > { %v532_v34 = vpop.f32.mrf.mxu0  ;;  %v575_v37 = vpop.f32.mrf.mxu1 }
  0xfa   : > { %v533_v41 = vadd.f32 %v532_v34, %v379_v32  ;;  %v576_v45 = vadd.f32 %v575_v37, %v387_v35  ;;  %v668_v60 = vmax.f32 %v531_v44, 0.0  ;;  %v670_v0 = vmax.f32 %v574_v48, 0.0  ;;  %v1815_v34 = vld [vmem:[%s2016_s28 + $0x120] sm:$0xff]   ;;  %v1818_v37 = vld [vmem:[%s2016_s28 + $0x1d8] sm:$0xff]   ;;  %v1823_v44 = vld [vmem:[%s2016_s28 + $0x110] sm:$0xff]  }
  0xfb   : > { %v534_v39 = vpop.f32.mrf.mxu0  ;;  %v577_v43 = vpop.f32.mrf.mxu1 }
  0xfc   : > { %v535_v42 = vadd.f32 %v534_v39, %v375_v33  ;;  %v578_v46 = vadd.f32 %v577_v43, %v383_v36  ;;  %v669_v56 = vmax.f32 %v533_v41, 0.0  ;;  %v671_v61 = vmax.f32 %v576_v45, 0.0  ;;  %v1814_v33 = vld [vmem:[%s2016_s28 + $0x1e0] sm:$0xff]   ;;  %v1817_v36 = vld [vmem:[%s2016_s28 + $0x158] sm:$0xff]   ;;  %v1821_v41 = vld [vmem:[%s2016_s28 + $0x150] sm:$0xff]  }
  0xfd   : > { %v536_v47 = vpop.f32.mrf.mxu0  ;;  %v579_v50 = vpop.f32.mrf.mxu1  ;;  %v390_v39 = vsub.s32 4, %v2081_v24  ;;  %v1822_v43 = vld [vmem:[%s2016_s28 + $0x1d0] sm:$0xff]  }
  0xfe   : > { %v537_v49 = vadd.f32 %v536_v47, %v379_v32  ;;  %v676_v52 = vmax.f32 %v535_v42, 0.0  ;;  %v580_v53 = vadd.f32 %v579_v50, %v387_v35  ;;  %v678_v57 = vmax.f32 %v578_v46, 0.0  ;;  %v1816_v35 = vld [vmem:[%s2016_s28 + $0x1a0] sm:$0xff]   ;;  %v1824_v46 = vld [vmem:[%s2016_s28 + $0x190] sm:$0xff]   ;;  %v1825_v47 = vld [vmem:[%s2016_s28 + $0x148] sm:$0xff]  }
  0xff   : > { %v2101_v54 = vpop.f32.mrf.mxu0  ;;  %v2104_v59 = vpop.f32.mrf.mxu1  ;;  %v398_v42 = vsub.s32 6, %v2081_v24  ;;  %v391_v45 = vrot.slane %v2091_v28, %v390_v39  ;;  %v1827_v24 = vld [vmem:[%s2016_s28 + $0x108] sm:$0xff]  }
 0x100   : > { %v677_v58 = vmax.f32 %v537_v49, 0.0  ;;  %v679_v62 = vmax.f32 %v580_v53, 0.0  ;;  %v686_v5 = vpack.c.bf16 %v676_v52, %v668_v60  ;;  %v688_v11 = vpack.c.bf16 %v678_v57, %v670_v0  ;;  %v1826_v49 = vld [vmem:[%s2016_s28 + $0x1c8] sm:$0xff]   ;;  %v1829_v53 = vld [vmem:[%s2016_s28 + $0x140] sm:$0xff]  }
 0x101   : > { %v618_v63 = vpop.f32.mrf.mxu0  ;;  %v661_v4 = vpop.f32.mrf.mxu1  ;;  %v399_v48 = vrot.slane %v2091_v28, %v398_v42  ;;  %v617_v50 = vadd.f32 %v2101_v54, %v391_v45  ;;  %v1828_v52 = vld [vmem:[%s2016_s28 + $0x188] sm:$0xff]   ;;  %v1830_v28 = vld [vmem:[%s2016_s28 + $0x1c0] sm:$0xff]  }
 0x102   : > { %v687_v1 = vpack.c.bf16 %v677_v58, %v669_v56  ;;  %v619_v3 = vadd.f32 %v618_v63, %v395_v51  ;;  %v689_v6 = vpack.c.bf16 %v679_v62, %v671_v61  ;;  %v662_v10 = vadd.f32 %v661_v4, %v403_v55  ;;  %v1831_v57 = vld [vmem:[%s2016_s28 + $0x100] sm:$0xff]  }
 0x103   : > { %v2109_v9 = vpop.f32.mrf.mxu0  ;;  %v2112_v13 = vpop.f32.mrf.mxu1  ;;  %v672_v58 = vmax.f32 %v617_v50, 0.0  ;;  %v1832_v54 = vld [vmem:[%s2016_s28 + $0x180] sm:$0xff]  }
 0x104   : > { %1238 = vmatprep.mubr.bf16.mxu0 %v687_v1  ;;  %1279 = vmatprep.mubr.bf16.mxu1 %v689_v6  ;;  %v673_v16 = vmax.f32 %v619_v3, 0.0  ;;  %v675_v21 = vmax.f32 %v662_v10, 0.0  ;;  %v664_v56 = vadd.f32 %v2112_v13, %v399_v48 }
 0x105   : > { %1239 = vmatmul.mubr.bf16.vlgmr.msra.gmra.mxu0 %v686_v5  ;;  %v622_v14 = vpop.f32.mrf.mxu0  ;;  %1280 = vmatmul.mubr.bf16.vlgmr.msra.gmra.mxu1 %v688_v11  ;;  %v665_v18 = vpop.f32.mrf.mxu1 }
 0x106   : > { %1675 = vmatpush3.bf16.msra.mxu0 %v1803_v2  ;;  %v623_v17 = vadd.f32 %v622_v14, %v395_v51  ;;  %1697 = vmatpush3.bf16.msra.mxu1 %v1804_v7  ;;  %v666_v22 = vadd.f32 %v665_v18, %v403_v55  ;;  %v621_v51 = vadd.f32 %v2109_v9, %v391_v45  ;;  %v682_v62 = vmax.f32 %v664_v56, 0.0 }
 0x107   : > { %1676 = vmatprep.subr.bf16.mxu0 %v1805_v8  ;;  %1698 = vmatprep.subr.bf16.mxu1 %v1806_v12  ;;  %v660_v55 = vadd.f32 %v2104_v59, %v399_v48 }
 0x108   : > { %v681_v25 = vmax.f32 %v623_v17, 0.0  ;;  %v683_v26 = vmax.f32 %v666_v22, 0.0  ;;  %v680_v60 = vmax.f32 %v621_v51, 0.0  ;;  %v684_v22 = vld [vmem:[#allocation2] sm:$0xff] }
 0x109   : > { %v674_v61 = vmax.f32 %v660_v55, 0.0 }
 0x10a   : > { %1677 = vmatpush3.bf16.msra.mxu0 %v1807_v15  ;;  %v691_v29 = vpack.c.bf16 %v681_v25, %v673_v16  ;;  %1699 = vmatpush3.bf16.msra.mxu1 %v1808_v19  ;;  %v693_v32 = vpack.c.bf16 %v683_v26, %v675_v21  ;;  %v690_v63 = vpack.c.bf16 %v680_v60, %v672_v58 }
 0x10b   : > { %1678 = vmatprep.subr.bf16.mxu0 %v1809_v20  ;;  %1700 = vmatprep.subr.bf16.mxu1 %v1810_v23  ;;  %v692_v0 = vpack.c.bf16 %v682_v62, %v674_v61 }
 0x10c   : > { %1320 = vmatprep.mubr.bf16.mxu0 %v691_v29  ;;  %1361 = vmatprep.mubr.bf16.mxu1 %v693_v32 }
 0x10e   : > { %1679 = vmatpush3.bf16.msra.mxu0 %v1811_v27  ;;  %1701 = vmatpush3.bf16.msra.mxu1 %v1812_v30 }
 0x10f   : > { %1680 = vmatprep.subr.bf16.mxu0 %v1813_v31  ;;  %1702 = vmatprep.subr.bf16.mxu1 %v1814_v33  ;;  %v685_v33 = vld [vmem:[#allocation2 + $0x8] sm:$0xff] }
 0x112   : > { %1681 = vmatpush3.bf16.msra.mxu0 %v1815_v34  ;;  %1703 = vmatpush3.bf16.msra.mxu1 %v1816_v35 }
 0x113   : > { %1682 = vmatprep.subr.bf16.mxu0 %v1817_v36  ;;  %1704 = vmatprep.subr.bf16.mxu1 %v1818_v37 }
 0x116   : > { %1683 = vmatpush3.bf16.msra.mxu0 %v1819_v38  ;;  %1705 = vmatpush3.bf16.msra.mxu1 %v1820_v40 }
 0x117   : > { %1684 = vmatprep.subr.bf16.mxu0 %v1821_v41  ;;  %1706 = vmatprep.subr.bf16.mxu1 %v1822_v43 }
 0x11a   : > { %1685 = vmatpush3.bf16.msra.mxu0 %v1823_v44  ;;  %1707 = vmatpush3.bf16.msra.mxu1 %v1824_v46 }
 0x11b   : > { %1686 = vmatprep.subr.bf16.mxu0 %v1825_v47  ;;  %1708 = vmatprep.subr.bf16.mxu1 %v1826_v49 }
 0x11e   : > { %1687 = vmatpush3.bf16.msra.mxu0 %v1827_v24  ;;  %1709 = vmatpush3.bf16.msra.mxu1 %v1828_v52 }
 0x11f   : > { %1688 = vmatprep.subr.bf16.mxu0 %v1829_v53  ;;  %1710 = vmatprep.subr.bf16.mxu1 %v1830_v28 }
 0x122   : > { %1689 = vmatpush3.bf16.msra.mxu0 %v1831_v57  ;;  %1711 = vmatpush3.bf16.msra.mxu1 %v1832_v54 }
 0x125   : > { %1321 = vmatmul.mubr.bf16.vlgmr.msra.gmra.mxu0 %v690_v63  ;;  %1362 = vmatmul.mubr.bf16.vlgmr.msra.gmra.mxu1 %v692_v0 }
 0x1c5   : > { %v1646_v59 = vpop.f32.mrf.mxu0  ;;  %v1668_v1 = vpop.f32.mrf.mxu1 }
 0x1c7   : > { %v1647_v2 = vpop.f32.mrf.mxu0  ;;  %v1669_v3 = vpop.f32.mrf.mxu1 }
 0x1c8   : > { %v1648_v7 = vadd.f32 %v1647_v2, %v1646_v59  ;;  %v1670_v8 = vadd.f32 %v1669_v3, %v1668_v1 }
 0x1c9   : > { %v1649_v4 = vpop.f32.mrf.mxu0  ;;  %v1671_v5 = vpop.f32.mrf.mxu1 }
 0x1ca   : > { %v1282_v13 = vadd.f32 %v1670_v8, %v1648_v7 }
 0x1cb   : > { %v1650_v6 = vpop.f32.mrf.mxu0  ;;  %v1672_v9 = vpop.f32.mrf.mxu1 }
 0x1cc   : > { %v1651_v14 = vadd.f32 %v1650_v6, %v1649_v4  ;;  %v1673_v15 = vadd.f32 %v1672_v9, %v1671_v5 }
 0x1ce   : > { %v1285_v25 = vadd.f32 %v1673_v15, %v1651_v14 }
 0x1e5   : > { %v1690_v10 = vpop.f32.mrf.mxu0  ;;  %v1712_v11 = vpop.f32.mrf.mxu1 }
 0x1e7   : > { %v1691_v12 = vpop.f32.mrf.mxu0  ;;  %v1713_v17 = vpop.f32.mrf.mxu1 }
 0x1e8   : > { %v1692_v16 = vadd.f32 %v1691_v12, %v1690_v10  ;;  %v1714_v20 = vadd.f32 %v1713_v17, %v1712_v11 }
 0x1e9   : > { %v1693_v18 = vpop.f32.mrf.mxu0  ;;  %v1715_v21 = vpop.f32.mrf.mxu1 }
 0x1ea   : > { %v1323_v19 = vadd.f32 %v1692_v16, %v1282_v13 }
 0x1eb   : > { %v1694_v23 = vpop.f32.mrf.mxu0  ;;  %v1716_v29 = vpop.f32.mrf.mxu1 }
 0x1ec   : > { %v1364_v26 = vadd.f32 %v1714_v20, %v1323_v19  ;;  %v1695_v27 = vadd.f32 %v1694_v23, %v1693_v18  ;;  %v1717_v32 = vadd.f32 %v1716_v29, %v1715_v21 }
 0x1ee   : > { %v1370_v30 = vadd.f32 %v1364_v26, %v684_v22  ;;  %v1326_v31 = vadd.f32 %v1695_v27, %v1285_v25 }
 0x1f0   : > { %1372 = vst.msk [vmem:[#allocation2] sm:$0xff] %vm492_vm1, %v1370_v30  ;;  %v1367_v34 = vadd.f32 %v1717_v32, %v1326_v31  ;;  %1377 = sbr.rel (%p1623_p12) target bundleno = 817 (0x331), region = 71 }
 0x1f2   : > { %v1371_v35 = vadd.f32 %v1367_v34, %v685_v33 }
 0x1f4   : > { %1373 = vst.msk [vmem:[#allocation2 + $0x8] sm:$0xff] %vm492_vm1, %v1371_v35 }
 0x1f5   : > { %v1624_v37 = vld [vmem:[%s2202_s4] ss:$0 sm:$0xff]  ;;  %v1390_v41 = vld [vmem:[%s2198_s0 + $0x8] sm:$0xff] }
 0x1f6   : > { %v1389_v38 = vld [vmem:[%s2198_s0] sm:$0xff] }
 0x1f7   : > { %v1378_v36 = vld [vmem:[#allocation2] sm:$0xff] }
 0x1f8   : > { %v1387_v39 = vadd.f32 %v1624_v37, %v1378_v36 }
 0x1fa   : > { %v1391_v43 = vadd.f32 %v1389_v38, %v1387_v39 }
 0x1fb   : > { %v1379_v40 = vld [vmem:[#allocation2 + $0x8] sm:$0xff] }
 0x1fc   : > { %v1388_v42 = vadd.f32 %v1624_v37, %v1379_v40  ;;  %v1393_v45 = vsel %vm492_vm1, %v1391_v43, 0.0 }
 0x1fd   : > { %1394 = vadd.xlane.f32.xlu0 %v1393_v45 }
 0x1fe   : > { %v1392_v44 = vadd.f32 %v1390_v41, %v1388_v42 }
 0x200   : > { %v1396_v46 = vsel %vm492_vm1, %v1392_v44, 0.0 }
 0x201   : > { %1397 = vadd.xlane.f32.xlu0 %v1396_v46 }
 0x286   : > { %v1395_v47 = vpop.xlane.xlu0 %1394 }
 0x287   : > { %v1400_v48 = vmul.f32 0.03125, %v1395_v47 }
 0x289   : > { %v1402_v49 = vsub.f32 %v1391_v43, %v1400_v48 }
 0x28a   : > { %v1398_v24 = vpop.xlane.xlu0 %1397 }
 0x28b   : > { %v1401_v50 = vmul.f32 0.03125, %v1398_v24  ;;  %v1404_v51 = vmul.f32 %v1402_v49, %v1402_v49 }
 0x28d   : > { %v1403_v52 = vsub.f32 %v1392_v44, %v1401_v50  ;;  %v1406_v53 = vsel %vm492_vm1, %v1404_v51, 0.0 }
 0x28e   : > { %1407 = vadd.xlane.f32.xlu1 %v1406_v53 }
 0x28f   : > { %v1405_v55 = vmul.f32 %v1403_v52, %v1403_v52 }
 0x291   : > { %v1409_v56 = vsel %vm492_vm1, %v1405_v55, 0.0 }
 0x292   : > { %1410 = vadd.xlane.f32.xlu1 %v1409_v56 }
 0x317   : > { %v1408_v28 = vpop.xlane.xlu1 %1407 }
 0x318   : > { %v1412_v57 = vmul.f32 0.03125, %v1408_v28 }
 0x31a   : > { %v1414_v58 = vadd.f32 1e-05, %v1412_v57 }
 0x31b   : > { %v1411_v60 = vpop.xlane.xlu1 %1410 }
 0x31c   : > { %1833 = vrsqrt.f32 %v1414_v58  ;;  %v1413_v54 = vmul.f32 0.03125, %v1411_v60 }
 0x31e   : > { %v1415_v61 = vadd.f32 1e-05, %v1413_v54 }
 0x320   : > { %1835 = vrsqrt.f32 %v1415_v61 }
 0x329   : > { %v1834_v62 = vpop.eup %1833 }
 0x32a   : > { %v1418_v63 = vmul.f32 %v1834_v62, %v1402_v49 }
 0x32c   : > { %1420 = vst.msk [vmem:[#allocation4] sm:$0xff] %vm492_vm1, %v1418_v63 }
 0x32d   : > { %v1836_v0 = vpop.eup %1835 }
 0x32e   : > { %v1419_v59 = vmul.f32 %v1836_v0, %v1403_v52 }
 0x330   : > { %1421 = vst.msk [vmem:[#allocation4 + $0x8] sm:$0xff] %vm492_vm1, %v1419_v59 }
 0x331 PF: > { %p2168_p13 = scmp.eq.s32.totalorder %s1526_s23, 1  ;;  %s1907_s16 = smov [#allocation4]  }
 0x332   : > { %s1431_s17 = sshll.u32 %s1907_s16, 4  ;;  %s1432_s17 = int_to_ptr.vmem [resolvable:$true] %s1431_s17 }
 0x333   : > { %s1837_s25 = scalar_lea.vmem %s1432_s17, 256  ;;  %p1844_p3 = scmp.lt.s32.totalorder %s1432_s17, %s1432_s17 }
 0x334   : > { %p1838_p0 = scmp.ne.s32.totalorder %s1432_s17, %s1837_s25  ;;  %p1845_p4 = scmp.lt.s32.totalorder %s1837_s25, %s1837_s25 }
 0x336   : > { %p1839_p1 = pnand %p1838_p0, %p2168_p13  ;;  %p1846_p5 = por %p1845_p4, %p1844_p3 }
 0x338   : > { %p1840_p2 = pneg %p1839_p1 }
 0x33a   : > { %p1847_p6 = pnand %p1846_p5, %p1840_p2 }
 0x33c   : > { %1850 = shalt.err (!%p1847_p6)
}
 0x33d   : > { %s1908_s26 = smov 128   ;;  %s1909_s23 = smov 8  }
 0x33e   : > { %1719 = dma.vmem_to_hbm [thread:$0]  (%p2168_p13), %s1432_s17, 256, %s2203_s5, [#allocation5], %s1908_s26, %s1908_s26, %s1909_s23  }
 0x33f   : > { %1882 = dma.done.wait (%p2168_p13), [#allocation5], 256  }
 0x340   : > { %1884 = vsyncadd (%p2168_p13), [#allocation5], 4294967040 }
 0x341 PF: > { %s16_s22 = sadd.s32 1, %s1903_s22   ;;  %s2205_s18 = smov %s1891_s19 }
 0x342   : > { %p13_p7 = scmp.ge.s32.totalorder %s16_s22, 4   ;;  %s2206_s19 = smov %s1976_s27 }
 0x343   : > { %s2207_s20 = smov %s1899_s21  ;;  %s2208_s21 = smov %s2210_s24 }
 0x344   :  { %15 = sbr.rel (!%p13_p7) target bundleno = 3 (0x3), region = 113 }
 0x349   :  { %1447 = vsyncpa [#allocation5], 1 }
 0x34a   :  { %1449 = vsyncpa [#allocation5 + $0x1], 1 }

</bundles_post_ra>
